<compile_context>
chip_gen: v6e
topology: v6e:2x2x1
jax: 0.10.0
libtpu: 0.0.40
codegen_flags: <defaults>
</compile_context>

<pallas_src>
import functools

import jax
import jax.numpy as jnp
from jax.experimental import pallas as pl
from jax.experimental.pallas import tpu as pltpu


# ---------------------------------------------------------------------------
# Internal layouts (everything y-major, batch-minor so all in-kernel ops stay
# lane/sublane friendly):
#   S1[y*bt + b, x*8 + ci]   = dilated+padded conv1 input   (16 rows, 128 lanes)
#   C1[oh*bt + b, x2*16+co]  = conv1 output in conv2's dilated COLUMN layout
#                              (14 valid rows, 512 lanes incl. pad)
#   conv2 output rows are split by parity: even rows need only the kh=1 tap,
#   odd rows need kh=0 and kh=2 (row dilation handled analytically).
# ---------------------------------------------------------------------------
def _shift_rows_up(x, k):
    """y[m] = x[m + k]; the last k rows are zero."""
    if k == 0:
        return x
    pad = jnp.zeros((k, x.shape[1]), x.dtype)
    return jnp.concatenate([x[k:, :], pad], axis=0)


def _decoder_kernel(x_ref, w1_ref, b1_ref, r1_ref, bb1_ref, r2_ref, b2_ref,
                    o_ref, *, bt):
    # ---- 1) Linear + ReLU.  W1g columns are pre-scattered into the dilated/
    #      padded conv1-input layout (zeros where padding/dilation zeros live).
    h = jnp.dot(x_ref[...], w1_ref[...], preferred_element_type=jnp.float32)
    h = jnp.maximum(h + b1_ref[...], 0.0)                     # (bt, 2048)

    # y-major S1: row y*bt + b  <-  128-lane block y of h (aligned lane slices).
    s1 = jnp.concatenate(
        [h[:, 128 * y:128 * (y + 1)] for y in range(16)], axis=0)  # (16*bt,128)

    # ---- 2) ConvTranspose1: 3 MXU matmuls (one per kh tap) on the whole tile,
    #      combined with row shifts of the matmul outputs.
    p0 = jnp.dot(s1, r1_ref[0:128, :], preferred_element_type=jnp.float32)
    p1 = jnp.dot(s1, r1_ref[128:256, :], preferred_element_type=jnp.float32)
    p2 = jnp.dot(s1, r1_ref[256:384, :], preferred_element_type=jnp.float32)
    acc1 = p0 + _shift_rows_up(p1, bt) + _shift_rows_up(p2, 2 * bt)
    c1 = jnp.maximum(acc1 + bb1_ref[...], 0.0)                # (16*bt, 512)
    # rows with y >= 14 are shift junk; they feed conv2's bottom-pad taps and
    # must be exactly zero.
    row = jax.lax.broadcasted_iota(jnp.int32, (16 * bt, 512), 0)
    c1 = jnp.where(row < 14 * bt, c1, 0.0)

    # ---- 3) ConvTranspose2 + Sigmoid, subpixel in the row direction:
    #      even output rows (2m)   = c1[m]   . R2_kh=1
    #      odd  output rows (2m+1) = c1[m]   . R2_kh=0  +  c1[m+1] . R2_kh=2
    q0 = jnp.dot(c1, r2_ref[0:512, :], preferred_element_type=jnp.float32)
    q1 = jnp.dot(c1, r2_ref[512:1024, :], preferred_element_type=jnp.float32)
    q2 = jnp.dot(c1, r2_ref[1024:1536, :], preferred_element_type=jnp.float32)
    b2 = b2_ref[0]                                             # scalar from SMEM
    even = jax.nn.sigmoid(q1 + b2)                             # (16*bt, 128)
    odd = jax.nn.sigmoid(q0 + _shift_rows_up(q2, bt) + b2)     # (16*bt, 128)
    o_ref[0] = even.astype(o_ref.dtype)                        # aligned bulk store
    o_ref[1] = odd.astype(o_ref.dtype)


# ---------------------------------------------------------------------------
# One-time parameter re-layout (layout plumbing, outside the hot path)
# ---------------------------------------------------------------------------
def prepare_params(params):
    lin_w, lin_b = params["lin_w"], params["lin_b"]            # (392,10), (392,)
    w1, b1 = params["ct1_w"], params["ct1_b"]                  # (8,16,3,3), (16,)
    w2, b2 = params["ct2_w"], params["ct2_b"]                  # (16,1,3,3), (1,)

    # Linear weight folded with reshape -> NCHW(7x7) -> stride-2 dilation -> pad,
    # column order (y, x, ci); zero columns where the dilated/padded image is 0.
    w1r = jnp.transpose(lin_w.reshape(8, 7, 7, 10), (1, 2, 0, 3))     # [i,j,ci,k]
    w1g = jnp.zeros((16, 16, 8, 10), jnp.float32).at[1:14:2, 1:14:2].set(w1r)
    w1g = w1g.reshape(16 * 16 * 8, 10).T                              # (10, 2048)
    b1r = jnp.transpose(lin_b.reshape(8, 7, 7), (1, 2, 0))
    b1g = (jnp.zeros((16, 16, 8), jnp.float32)
           .at[1:14:2, 1:14:2].set(b1r).reshape(1, 2048))

    # Lowered conv1 weight R1 (3*128, 512):
    #   R1[kh*128 + (ow+kw)*8 + ci, (1+2*ow)*16 + co] = w1[ci, co, 2-kh, 2-kw]
    # (columns already in conv2's dilated/padded column layout, padded to 512).
    wf1 = jnp.transpose(w1[:, :, ::-1, ::-1], (2, 3, 0, 1)).reshape(3, 24, 16)
    r1 = jnp.zeros((3, 128, 512), jnp.float32)
    for kh in range(3):
        for ow in range(14):
            r1 = r1.at[kh, ow * 8:ow * 8 + 24,
                       (1 + 2 * ow) * 16:(1 + 2 * ow) * 16 + 16].set(wf1[kh])
    r1 = r1.reshape(384, 512)

    # conv1 bias scattered into the dilated/padded column layout (1, 512).
    bb1 = (jnp.zeros((32, 16), jnp.float32)
           .at[1:28:2, :].set(jnp.broadcast_to(b1, (14, 16))).reshape(1, 512))

    # Lowered conv2 weight R2 (3*512, 128):
    #   R2[kh*512 + (ow+kw)*16 + ci, ow] = w2[ci, 0, 2-kh, 2-kw]
    # (output columns padded 28 -> 128 lanes with zero columns).
    wf2 = jnp.transpose(w2[:, :, ::-1, ::-1], (2, 3, 0, 1)).reshape(3, 48, 1)
    r2 = jnp.zeros((3, 512, 128), jnp.float32)
    for kh in range(3):
        for ow in range(28):
            r2 = r2.at[kh, ow * 16:ow * 16 + 48, ow:ow + 1].set(wf2[kh])
    r2 = r2.reshape(1536, 128)

    return {"w1g": w1g, "b1g": b1g, "r1": r1, "bb1": bb1, "r2": r2,
            "b2": b2.reshape(1).astype(jnp.float32)}


# ---------------------------------------------------------------------------
# Forward: one pallas_call, batch tiled over a parallel grid
# ---------------------------------------------------------------------------
def decoder_forward(prep, x, *, batch_tile=2):
    B = x.shape[0]
    bt = max(1, min(batch_tile, B))
    G = -(-B // bt)
    Bp = G * bt
    if Bp != B:
        x = jnp.concatenate([x, jnp.zeros((Bp - B, x.shape[1]), x.dtype)], 0)
    xg = x.reshape(G, bt, 10).astype(jnp.float32)

    kern = functools.partial(_decoder_kernel, bt=bt)
    out = pl.pallas_call(
        kern,
        out_shape=jax.ShapeDtypeStruct((G, 2, bt * 16, 128), jnp.float32),
        grid=(G,),
        in_specs=[
            pl.BlockSpec((None, bt, 10), lambda i: (i, 0, 0)),        # x tile
            pl.BlockSpec((10, 2048), lambda i: (0, 0)),               # W1g
            pl.BlockSpec((1, 2048), lambda i: (0, 0)),                # b1g
            pl.BlockSpec((384, 512), lambda i: (0, 0)),               # R1
            pl.BlockSpec((1, 512), lambda i: (0, 0)),                 # bb1
            pl.BlockSpec((1536, 128), lambda i: (0, 0)),              # R2
            pl.BlockSpec(memory_space=pltpu.MemorySpace.SMEM),        # b2 scalar
        ],
        out_specs=pl.BlockSpec((None, 2, bt * 16, 128),
                               lambda i: (i, 0, 0, 0)),
        compiler_params=pltpu.CompilerParams(
            dimension_semantics=("parallel",)),
    )(xg, prep["w1g"], prep["b1g"], prep["r1"], prep["bb1"], prep["r2"],
      prep["b2"])

    # (g, parity, y*bt + b, ow) -> (B, 1, 28, 28); pure XLA relayout.
    out = out.reshape(G, 2, 16, bt, 128)
    out = jnp.transpose(out, (0, 3, 2, 1, 4)).reshape(Bp, 32, 128)
    return out[:B, :28, :28].reshape(B, 1, 28, 28)


# ---------------------------------------------------------------------------
# Deterministic synthetic parameters (PyTorch layouts)
# ---------------------------------------------------------------------------
def init_params(key):
    k = jax.random.split(key, 6)

    def u(kk, shape, fan_in):
        bound = 1.0 / jnp.sqrt(float(fan_in))
        return jax.random.uniform(kk, shape, jnp.float32, -bound, bound)

    return {
        "lin_w": u(k[0], (8 * 7 * 7, 10), 10),     # nn.Linear(10, 392)
        "lin_b": u(k[1], (8 * 7 * 7,), 10),
        "ct1_w": u(k[2], (8, 16, 3, 3), 8 * 9),    # ConvTranspose2d(8, 16, 3)
        "ct1_b": u(k[3], (16,), 8 * 9),
        "ct2_w": u(k[4], (16, 1, 3, 3), 16 * 9),   # ConvTranspose2d(16, 1, 3)
        "ct2_b": u(k[5], (1,), 16 * 9),
    }


# ---------------------------------------------------------------------------
# Pure-JAX reference (sanity check)
# ---------------------------------------------------------------------------
def _ref_forward(params, x):
    h = jnp.maximum(x @ params["lin_w"].T + params["lin_b"], 0.0)
    h = h.reshape(x.shape[0], 8, 7, 7)

    def ct(h, w, b, act):
        K = w.shape[2]
        wk = jnp.transpose(w, (1, 0, 2, 3))[:, :, ::-1, ::-1]   # (Co,Ci,K,K)
        y = jax.lax.conv_general_dilated(
            h, wk, window_strides=(1, 1),
            padding=[(K - 2, K - 1), (K - 2, K - 1)],
            lhs_dilation=(2, 2),
            dimension_numbers=("NCHW", "OIHW", "NCHW"))
        y = y + b.reshape(1, -1, 1, 1)
        return jnp.maximum(y, 0.0) if act == "relu" else jax.nn.sigmoid(y)

    h = ct(h, params["ct1_w"], params["ct1_b"], "relu")
    h = ct(h, params["ct2_w"], params["ct2_b"], "sigmoid")
    return h


if __name__ == "__main__":
    key = jax.random.PRNGKey(0)
    kp, kx = jax.random.split(key)
    params = init_params(kp)
    x = jax.random.normal(kx, (4, 10), jnp.float32)   # batch=4, latent dim=10

    prep = prepare_params(params)                     # one-time weight re-layout
    fwd = jax.jit(decoder_forward)                    # batch_tile=2 -> grid=(2,)
    out = jax.block_until_ready(fwd(prep, x))
    assert out.shape == (4, 1, 28, 28), out.shape

    ref = _ref_forward(params, x)
    err = float(jnp.max(jnp.abs(out - ref)))
    assert err < 1e-4, f"max abs err {err}"

    print("KERNEL_OK")
</pallas_src>

<mosaic_0001>
module attributes {stable_mosaic.version = 11 : i64} {
  func.func @_decoder_kernel(%arg0: i32, %arg1: memref<1x2x10xf32, #tpu.memory_space<vmem>>, %arg2: memref<10x2048xf32, #tpu.memory_space<vmem>>, %arg3: memref<1x2048xf32, #tpu.memory_space<vmem>>, %arg4: memref<384x512xf32, #tpu.memory_space<vmem>>, %arg5: memref<1x512xf32, #tpu.memory_space<vmem>>, %arg6: memref<1536x128xf32, #tpu.memory_space<vmem>>, %arg7: memref<1xf32, #tpu.memory_space<smem>>, %arg8: memref<1x2x32x128xf32, #tpu.memory_space<vmem>>) attributes {dimension_semantics = [#tpu.dimension_semantics<parallel>], iteration_bounds = array<i64: 2>, scalar_prefetch = 0 : i64, scratch_operands = 0 : i64, tpu.core_type = #tpu.core_type<tc>, window_params = [{transform_indices = @transform_0, window_bounds = array<i64: 1, 2, 10>}, {pipeline_mode = #tpu.pipeline_mode<synchronous>, transform_indices = @transform_1, window_bounds = array<i64: 10, 2048>}, {pipeline_mode = #tpu.pipeline_mode<synchronous>, transform_indices = @transform_2, window_bounds = array<i64: 1, 2048>}, {pipeline_mode = #tpu.pipeline_mode<synchronous>, transform_indices = @transform_3, window_bounds = array<i64: 384, 512>}, {pipeline_mode = #tpu.pipeline_mode<synchronous>, transform_indices = @transform_4, window_bounds = array<i64: 1, 512>}, {pipeline_mode = #tpu.pipeline_mode<synchronous>, transform_indices = @transform_5, window_bounds = array<i64: 1536, 128>}, {transform_indices = @transform_6, window_bounds = array<i64: 1>}, {transform_indices = @transform_7, window_bounds = array<i64: 1, 2, 32, 128>}]} {
    %c0 = arith.constant 0 : index
    %c0_0 = arith.constant 0 : index
    %c0_1 = arith.constant 0 : index
    %0 = vector.load %arg1[%c0, %c0_0, %c0_1] : memref<1x2x10xf32, #tpu.memory_space<vmem>>, vector<1x2x10xf32>
    %1 = vector.shape_cast %0 : vector<1x2x10xf32> to vector<2x10xf32>
    %c0_2 = arith.constant 0 : index
    %c0_3 = arith.constant 0 : index
    %2 = vector.load %arg2[%c0_2, %c0_3] : memref<10x2048xf32, #tpu.memory_space<vmem>>, vector<10x2048xf32>
    %cst = arith.constant dense<0.000000e+00> : vector<2x2048xf32>
    %3 = tpu.matmul %1, %2, %cst {dimension_numbers = #tpu.dot_dimension_numbers<[1], [0], [0], [1], [0, 0, 1, 1], [], []>} : vector<2x10xf32>, vector<10x2048xf32>, vector<2x2048xf32> -> vector<2x2048xf32>
    %c0_4 = arith.constant 0 : index
    %c0_5 = arith.constant 0 : index
    %4 = vector.load %arg3[%c0_4, %c0_5] : memref<1x2048xf32, #tpu.memory_space<vmem>>, vector<1x2048xf32>
    %5 = vector.broadcast %4 : vector<1x2048xf32> to vector<2x2048xf32>
    %6 = arith.addf %3, %5 : vector<2x2048xf32>
    %cst_6 = arith.constant 0.000000e+00 : f32
    %7 = vector.broadcast %cst_6 : f32 to vector<2x2048xf32>
    %8 = arith.maximumf %6, %7 : vector<2x2048xf32>
    %9 = vector.extract_strided_slice %8 {offsets = [0, 0], sizes = [2, 128], strides = [1, 1]} : vector<2x2048xf32> to vector<2x128xf32>
    %10 = vector.extract_strided_slice %8 {offsets = [0, 128], sizes = [2, 128], strides = [1, 1]} : vector<2x2048xf32> to vector<2x128xf32>
    %11 = vector.extract_strided_slice %8 {offsets = [0, 256], sizes = [2, 128], strides = [1, 1]} : vector<2x2048xf32> to vector<2x128xf32>
    %12 = vector.extract_strided_slice %8 {offsets = [0, 384], sizes = [2, 128], strides = [1, 1]} : vector<2x2048xf32> to vector<2x128xf32>
    %13 = vector.extract_strided_slice %8 {offsets = [0, 512], sizes = [2, 128], strides = [1, 1]} : vector<2x2048xf32> to vector<2x128xf32>
    %14 = vector.extract_strided_slice %8 {offsets = [0, 640], sizes = [2, 128], strides = [1, 1]} : vector<2x2048xf32> to vector<2x128xf32>
    %15 = vector.extract_strided_slice %8 {offsets = [0, 768], sizes = [2, 128], strides = [1, 1]} : vector<2x2048xf32> to vector<2x128xf32>
    %16 = vector.extract_strided_slice %8 {offsets = [0, 896], sizes = [2, 128], strides = [1, 1]} : vector<2x2048xf32> to vector<2x128xf32>
    %17 = vector.extract_strided_slice %8 {offsets = [0, 1024], sizes = [2, 128], strides = [1, 1]} : vector<2x2048xf32> to vector<2x128xf32>
    %18 = vector.extract_strided_slice %8 {offsets = [0, 1152], sizes = [2, 128], strides = [1, 1]} : vector<2x2048xf32> to vector<2x128xf32>
    %19 = vector.extract_strided_slice %8 {offsets = [0, 1280], sizes = [2, 128], strides = [1, 1]} : vector<2x2048xf32> to vector<2x128xf32>
    %20 = vector.extract_strided_slice %8 {offsets = [0, 1408], sizes = [2, 128], strides = [1, 1]} : vector<2x2048xf32> to vector<2x128xf32>
    %21 = vector.extract_strided_slice %8 {offsets = [0, 1536], sizes = [2, 128], strides = [1, 1]} : vector<2x2048xf32> to vector<2x128xf32>
    %22 = vector.extract_strided_slice %8 {offsets = [0, 1664], sizes = [2, 128], strides = [1, 1]} : vector<2x2048xf32> to vector<2x128xf32>
    %23 = vector.extract_strided_slice %8 {offsets = [0, 1792], sizes = [2, 128], strides = [1, 1]} : vector<2x2048xf32> to vector<2x128xf32>
    %24 = vector.extract_strided_slice %8 {offsets = [0, 1920], sizes = [2, 128], strides = [1, 1]} : vector<2x2048xf32> to vector<2x128xf32>
    %25 = tpu.concatenate %9, %10, %11, %12, %13, %14, %15, %16, %17, %18, %19, %20, %21, %22, %23, %24 in 0 : vector<2x128xf32>, vector<2x128xf32>, vector<2x128xf32>, vector<2x128xf32>, vector<2x128xf32>, vector<2x128xf32>, vector<2x128xf32>, vector<2x128xf32>, vector<2x128xf32>, vector<2x128xf32>, vector<2x128xf32>, vector<2x128xf32>, vector<2x128xf32>, vector<2x128xf32>, vector<2x128xf32>, vector<2x128xf32> -> vector<32x128xf32>
    %c0_7 = arith.constant 0 : index
    %c0_8 = arith.constant 0 : index
    %26 = vector.load %arg4[%c0_7, %c0_8] : memref<384x512xf32, #tpu.memory_space<vmem>>, vector<128x512xf32>
    %cst_9 = arith.constant dense<0.000000e+00> : vector<32x512xf32>
    %27 = tpu.matmul %25, %26, %cst_9 {dimension_numbers = #tpu.dot_dimension_numbers<[1], [0], [0], [1], [0, 0, 1, 1], [], []>} : vector<32x128xf32>, vector<128x512xf32>, vector<32x512xf32> -> vector<32x512xf32>
    %c128 = arith.constant 128 : index
    %c0_10 = arith.constant 0 : index
    %28 = vector.load %arg4[%c128, %c0_10] : memref<384x512xf32, #tpu.memory_space<vmem>>, vector<128x512xf32>
    %cst_11 = arith.constant dense<0.000000e+00> : vector<32x512xf32>
    %29 = tpu.matmul %25, %28, %cst_11 {dimension_numbers = #tpu.dot_dimension_numbers<[1], [0], [0], [1], [0, 0, 1, 1], [], []>} : vector<32x128xf32>, vector<128x512xf32>, vector<32x512xf32> -> vector<32x512xf32>
    %c256 = arith.constant 256 : index
    %c0_12 = arith.constant 0 : index
    %30 = vector.load %arg4[%c256, %c0_12] : memref<384x512xf32, #tpu.memory_space<vmem>>, vector<128x512xf32>
    %cst_13 = arith.constant dense<0.000000e+00> : vector<32x512xf32>
    %31 = tpu.matmul %25, %30, %cst_13 {dimension_numbers = #tpu.dot_dimension_numbers<[1], [0], [0], [1], [0, 0, 1, 1], [], []>} : vector<32x128xf32>, vector<128x512xf32>, vector<32x512xf32> -> vector<32x512xf32>
    %cst_14 = arith.constant 0.000000e+00 : f32
    %32 = vector.broadcast %cst_14 : f32 to vector<2x512xf32>
    %33 = vector.extract_strided_slice %29 {offsets = [2, 0], sizes = [30, 512], strides = [1, 1]} : vector<32x512xf32> to vector<30x512xf32>
    %34 = tpu.concatenate %33, %32 in 0 : vector<30x512xf32>, vector<2x512xf32> -> vector<32x512xf32>
    %35 = arith.addf %27, %34 : vector<32x512xf32>
    %cst_15 = arith.constant 0.000000e+00 : f32
    %36 = vector.broadcast %cst_15 : f32 to vector<4x512xf32>
    %37 = vector.extract_strided_slice %31 {offsets = [4, 0], sizes = [28, 512], strides = [1, 1]} : vector<32x512xf32> to vector<28x512xf32>
    %38 = tpu.concatenate %37, %36 in 0 : vector<28x512xf32>, vector<4x512xf32> -> vector<32x512xf32>
    %39 = arith.addf %35, %38 : vector<32x512xf32>
    %c0_16 = arith.constant 0 : index
    %c0_17 = arith.constant 0 : index
    %40 = vector.load %arg5[%c0_16, %c0_17] : memref<1x512xf32, #tpu.memory_space<vmem>>, vector<1x512xf32>
    %41 = vector.broadcast %40 : vector<1x512xf32> to vector<32x512xf32>
    %42 = arith.addf %39, %41 : vector<32x512xf32>
    %cst_18 = arith.constant 0.000000e+00 : f32
    %43 = vector.broadcast %cst_18 : f32 to vector<32x512xf32>
    %44 = arith.maximumf %42, %43 : vector<32x512xf32>
    %45 = tpu.iota {dimensions = array<i32: 0>} : vector<32x512xi32>
    %c28_i32 = arith.constant 28 : i32
    %46 = vector.broadcast %c28_i32 : i32 to vector<32x512xi32>
    %47 = arith.cmpi slt, %45, %46 : vector<32x512xi32>
    %cst_19 = arith.constant 0.000000e+00 : f32
    %48 = vector.broadcast %cst_19 : f32 to vector<32x512xf32>
    %49 = arith.select %47, %44, %48 : vector<32x512xi1>, vector<32x512xf32>
    %c0_20 = arith.constant 0 : index
    %c0_21 = arith.constant 0 : index
    %50 = vector.load %arg6[%c0_20, %c0_21] : memref<1536x128xf32, #tpu.memory_space<vmem>>, vector<512x128xf32>
    %cst_22 = arith.constant dense<0.000000e+00> : vector<32x128xf32>
    %51 = tpu.matmul %49, %50, %cst_22 {dimension_numbers = #tpu.dot_dimension_numbers<[1], [0], [0], [1], [0, 0, 1, 1], [], []>} : vector<32x512xf32>, vector<512x128xf32>, vector<32x128xf32> -> vector<32x128xf32>
    %c512 = arith.constant 512 : index
    %c0_23 = arith.constant 0 : index
    %52 = vector.load %arg6[%c512, %c0_23] : memref<1536x128xf32, #tpu.memory_space<vmem>>, vector<512x128xf32>
    %cst_24 = arith.constant dense<0.000000e+00> : vector<32x128xf32>
    %53 = tpu.matmul %49, %52, %cst_24 {dimension_numbers = #tpu.dot_dimension_numbers<[1], [0], [0], [1], [0, 0, 1, 1], [], []>} : vector<32x512xf32>, vector<512x128xf32>, vector<32x128xf32> -> vector<32x128xf32>
    %c1024 = arith.constant 1024 : index
    %c0_25 = arith.constant 0 : index
    %54 = vector.load %arg6[%c1024, %c0_25] : memref<1536x128xf32, #tpu.memory_space<vmem>>, vector<512x128xf32>
    %cst_26 = arith.constant dense<0.000000e+00> : vector<32x128xf32>
    %55 = tpu.matmul %49, %54, %cst_26 {dimension_numbers = #tpu.dot_dimension_numbers<[1], [0], [0], [1], [0, 0, 1, 1], [], []>} : vector<32x512xf32>, vector<512x128xf32>, vector<32x128xf32> -> vector<32x128xf32>
    %c0_27 = arith.constant 0 : index
    %56 = memref.load %arg7[%c0_27] : memref<1xf32, #tpu.memory_space<smem>>
    %57 = vector.broadcast %56 : f32 to vector<32x128xf32>
    %58 = arith.addf %53, %57 : vector<32x128xf32>
    %59 = arith.negf %58 : vector<32x128xf32>
    %60 = math.exp %59 : vector<32x128xf32>
    %cst_28 = arith.constant 1.000000e+00 : f32
    %61 = vector.broadcast %cst_28 : f32 to vector<32x128xf32>
    %62 = arith.addf %61, %60 : vector<32x128xf32>
    %63 = arith.divf %61, %62 : vector<32x128xf32>
    %cst_29 = arith.constant 0.000000e+00 : f32
    %64 = vector.broadcast %cst_29 : f32 to vector<2x128xf32>
    %65 = vector.extract_strided_slice %55 {offsets = [2, 0], sizes = [30, 128], strides = [1, 1]} : vector<32x128xf32> to vector<30x128xf32>
    %66 = tpu.concatenate %65, %64 in 0 : vector<30x128xf32>, vector<2x128xf32> -> vector<32x128xf32>
    %67 = arith.addf %51, %66 : vector<32x128xf32>
    %68 = vector.broadcast %56 : f32 to vector<32x128xf32>
    %69 = arith.addf %67, %68 : vector<32x128xf32>
    %70 = arith.negf %69 : vector<32x128xf32>
    %71 = math.exp %70 : vector<32x128xf32>
    %cst_30 = arith.constant 1.000000e+00 : f32
    %72 = vector.broadcast %cst_30 : f32 to vector<32x128xf32>
    %73 = arith.addf %72, %71 : vector<32x128xf32>
    %74 = arith.divf %72, %73 : vector<32x128xf32>
    %c0_31 = arith.constant 0 : index
    %c0_32 = arith.constant 0 : index
    %c0_33 = arith.constant 0 : index
    %c0_34 = arith.constant 0 : index
    %75 = vector.load %arg8[%c0_31, %c0_32, %c0_33, %c0_34] : memref<1x2x32x128xf32, #tpu.memory_space<vmem>>, vector<1x1x32x128xf32>
    %76 = vector.shape_cast %75 : vector<1x1x32x128xf32> to vector<32x128xf32>
    %77 = vector.shape_cast %63 : vector<32x128xf32> to vector<1x1x32x128xf32>
    tpu.vector_store %arg8[%c0_31, %c0_32, %c0_33, %c0_34], %77 {strides = array<i32>} : memref<1x2x32x128xf32, #tpu.memory_space<vmem>>, vector<1x1x32x128xf32>,
    %c0_35 = arith.constant 0 : index
    %c1 = arith.constant 1 : index
    %c0_36 = arith.constant 0 : index
    %c0_37 = arith.constant 0 : index
    %78 = vector.load %arg8[%c0_35, %c1, %c0_36, %c0_37] : memref<1x2x32x128xf32, #tpu.memory_space<vmem>>, vector<1x1x32x128xf32>
    %79 = vector.shape_cast %78 : vector<1x1x32x128xf32> to vector<32x128xf32>
    %80 = vector.shape_cast %74 : vector<32x128xf32> to vector<1x1x32x128xf32>
    tpu.vector_store %arg8[%c0_35, %c1, %c0_36, %c0_37], %80 {strides = array<i32>} : memref<1x2x32x128xf32, #tpu.memory_space<vmem>>, vector<1x1x32x128xf32>,
    return
  }
  func.func @transform_0(%arg0: i32) -> (i32, i32, i32) {
    %c0_i32 = arith.constant 0 : i32
    %c0_i32_0 = arith.constant 0 : i32
    %c0_i32_1 = arith.constant 0 : i32
    return %arg0, %c0_i32, %c0_i32_0 : i32, i32, i32
  }
  func.func @transform_1(%arg0: i32) -> (i32, i32) {
    %c0_i32 = arith.constant 0 : i32
    %c0_i32_0 = arith.constant 0 : i32
    %c0_i32_1 = arith.constant 0 : i32
    return %c0_i32, %c0_i32_0 : i32, i32
  }
  func.func @transform_2(%arg0: i32) -> (i32, i32) {
    %c0_i32 = arith.constant 0 : i32
    %c0_i32_0 = arith.constant 0 : i32
    %c0_i32_1 = arith.constant 0 : i32
    return %c0_i32, %c0_i32_0 : i32, i32
  }
  func.func @transform_3(%arg0: i32) -> (i32, i32) {
    %c0_i32 = arith.constant 0 : i32
    %c0_i32_0 = arith.constant 0 : i32
    %c0_i32_1 = arith.constant 0 : i32
    return %c0_i32, %c0_i32_0 : i32, i32
  }
  func.func @transform_4(%arg0: i32) -> (i32, i32) {
    %c0_i32 = arith.constant 0 : i32
    %c0_i32_0 = arith.constant 0 : i32
    %c0_i32_1 = arith.constant 0 : i32
    return %c0_i32, %c0_i32_0 : i32, i32
  }
  func.func @transform_5(%arg0: i32) -> (i32, i32) {
    %c0_i32 = arith.constant 0 : i32
    %c0_i32_0 = arith.constant 0 : i32
    %c0_i32_1 = arith.constant 0 : i32
    return %c0_i32, %c0_i32_0 : i32, i32
  }
  func.func @transform_6(%arg0: i32) -> i32 {
    %c0_i32 = arith.constant 0 : i32
    %c0_i32_0 = arith.constant 0 : i32
    return %c0_i32 : i32
  }
  func.func @transform_7(%arg0: i32) -> (i32, i32, i32, i32) {
    %c0_i32 = arith.constant 0 : i32
    %c0_i32_0 = arith.constant 0 : i32
    %c0_i32_1 = arith.constant 0 : i32
    %c0_i32_2 = arith.constant 0 : i32
    return %arg0, %c0_i32, %c0_i32_0, %c0_i32_1 : i32, i32, i32, i32
  }
}

</mosaic_0001>

<bundles_post_ra>
// kernel: decoder_forward.1
= control target key start
LH: loop header
LB: loop body
LE: loop exit
PB: predicated region body
PF: predicated region fallthrough
CT: control target
= control target key end

     0   :  { %s4202_s0 = inlined_call_operand.vmem [shape: f32[2,2,10], index: 0, kind: input, shape index: {}]   ;;  %s4203_s1 = inlined_call_operand.hbm [shape: f32[10,2048], index: 1, kind: input, shape index: {}]   ;;  %s4204_s2 = inlined_call_operand.hbm [shape: f32[1,2048], index: 2, kind: input, shape index: {}]   ;;  %s4205_s3 = inlined_call_operand.hbm [shape: f32[384,512], index: 3, kind: input, shape index: {}]   ;;  %s4206_s4 = inlined_call_operand.hbm [shape: f32[1,512], index: 4, kind: input, shape index: {}]   ;;  %s4207_s5 = inlined_call_operand.hbm [shape: f32[1536,128], index: 5, kind: input, shape index: {}]   ;;  %s4208_s6 = inlined_call_operand.<no memory space> [shape: f32[1], index: 6, kind: input, shape index: {}]   ;;  %s4209_s7 = inlined_call_operand.vmem [shape: f32[2,2,32,128], index: 7, kind: output, shape index: {}]  }
   0x1   :  { %12 = sst [smem:[#allocation2]] %s4208_s6 }
   0x2   :  { %13 = vsyncpa [#allocation4], 0 }
   0x3   :  { %14 = vsyncpa [#allocation6], 0 }
   0x4   :  { %15 = vsyncpa [#allocation9], 0  ;;  %s3619_s26 = smov 0  }
   0x5 LB: > { %s3565_s27 = smov [#allocation5]   ;;  %s3625_s29 = sadd.s32 4294967295, %s3563_s26   ;;  %s3563_s26 = sphi %s3619_s26, %s21_s26  }
   0x6   : > { %s230_s28 = sshll.u32 %s3565_s27, 4  ;;  %p2987_p0 = scmp.ge.s32.totalorder %s3563_s26, 1  ;;  %s231_s28 = int_to_ptr.vmem [resolvable:$true] %s230_s28 }
   0x7   : > { %p204_p1 = scmp.lt.s32.totalorder %s3563_s26, 3  ;;  %p4210_p2 = scmp.eq.s32.totalorder %s3625_s29, 0 }
   0x8   : > { %s3566_s30 = smov [#allocation8]   ;;  %s3567_s9 = smov [#allocation3]  }
   0x9   : > { %p3630_p3 = pnand %p2987_p0, %p204_p1  ;;  %s254_s8 = sshll.u32 %s3566_s30, 4  ;;  %s255_s8 = int_to_ptr.vmem [resolvable:$true] %s254_s8 }
   0xa   : > { %s216_s10 = sshll.u32 %s3567_s9, 4  ;;  %s3568_s12 = smov [#allocation7]   ;;  %s3642_s10 = int_to_ptr.vmem [resolvable:$true] %s216_s10 }
   0xb   : > { %s4212_s6 = scalar_select %p3630_p3, 1, 0 }
   0xc   : > { %p3338_p4 = pneg %p3630_p3  ;;  %s3644_s13 = sshll.u32 %s3568_s12, 4  ;;  %s241_s13 = int_to_ptr.vmem [resolvable:$true] %s3644_s13 }
   0xd   : > { %s3426_s15 = scalar_lea.vmem %s231_s28, 256  ;;  %p3434_p10 = scmp.lt.s32.totalorder %s231_s28, %s231_s28 }
   0xe   : > { %p3638_p5 = pnand %p4210_p2, %p3338_p4  ;;  %p3427_p7 = scmp.ne.s32.totalorder %s231_s28, %s3426_s15 }
   0xf   : > { %p3435_p11 = scmp.lt.s32.totalorder %s3426_s15, %s3426_s15 }
  0x10   : > { %p3648_p6 = pneg %p3638_p5 }
  0x11   : > { %p3436_p12 = por %p3435_p11, %p3434_p10 }
  0x12   : > { %p3429_p8 = pnand %p3427_p7, %p3648_p6 }
  0x14   : > { %p3430_p9 = pneg %p3429_p8 }
  0x16   : > { %p3437_p13 = pnand %p3436_p12, %p3430_p9 }
  0x18   : > { %3440 = shalt.err (!%p3437_p13)
}
  0x19   : > { %3344 = dma.hbm_to_vmem [thread:$0]  (!%p3638_p5), %s4204_s2, 256, %s231_s28, [#allocation6]  }
  0x1a   : > { %s3452_s18 = scalar_lea.vmem %s255_s8, 64  ;;  %p3460_p2 = scmp.lt.s32.totalorder %s255_s8, %s255_s8 }
  0x1b   : > { %p3453_p0 = scmp.ne.s32.totalorder %s255_s8, %s3452_s18  ;;  %p3461_p7 = scmp.lt.s32.totalorder %s3452_s18, %s3452_s18 }
  0x1d   : > { %p3455_p1 = pnand %p3453_p0, %p3648_p6  ;;  %p3462_p8 = por %p3461_p7, %p3460_p2 }
  0x1f   : > { %p3456_p4 = pneg %p3455_p1 }
  0x21   : > { %p3463_p3 = pnand %p3462_p8, %p3456_p4 }
  0x23   : > { %3466 = shalt.err (!%p3463_p3)
}
  0x24   : > { %3350 = dma.hbm_to_vmem [thread:$0]  (!%p3638_p5), %s4206_s4, 64, %s255_s8, [#allocation9]  }
  0x25   : > { %s3478_s21 = scalar_lea.vmem %s3642_s10, 4096  ;;  %p3486_p12 = scmp.lt.s32.totalorder %s3642_s10, %s3642_s10 }
  0x26   : > { %p3479_p9 = scmp.ne.s32.totalorder %s3642_s10, %s3478_s21  ;;  %p3487_p2 = scmp.lt.s32.totalorder %s3478_s21, %s3478_s21 }
  0x28   : > { %p3481_p10 = pnand %p3479_p9, %p3648_p6  ;;  %p3488_p13 = por %p3487_p2, %p3486_p12 }
  0x2a   : > { %p3482_p11 = pneg %p3481_p10 }
  0x2c   : > { %p3489_p3 = pnand %p3488_p13, %p3482_p11 }
  0x2e   : > { %3492 = shalt.err (!%p3489_p3)
}
  0x2f   : > { %s3569_s22 = smov 2048   ;;  %s3570_s23 = smov 128  }
  0x30   : > { %3341 = dma.hbm_to_vmem [thread:$0]  (!%p3638_p5), %s4203_s1, 4096, %s3642_s10, [#allocation4], %s3569_s22, %s3569_s22, %s3570_s23  }
  0x31   : > { %s3504_s27 = scalar_lea.vmem %s241_s13, 24576  ;;  %p3512_p7 = scmp.lt.s32.totalorder %s241_s13, %s241_s13 }
  0x32   : > { %p3505_p0 = scmp.ne.s32.totalorder %s241_s13, %s3504_s27  ;;  %p3513_p8 = scmp.lt.s32.totalorder %s3504_s27, %s3504_s27 }
  0x34   : > { %p3507_p1 = pnand %p3505_p0, %p3648_p6  ;;  %p3514_p9 = por %p3513_p8, %p3512_p7 }
  0x36   : > { %p3508_p4 = pneg %p3507_p1 }
  0x38   : > { %p3515_p10 = pnand %p3514_p9, %p3508_p4 }
  0x3a   : > { %3518 = shalt.err (!%p3515_p10)
}
  0x3b   : > { %s3571_s28 = smov 512   ;;  %s3572_s30 = smov 32  }
  0x3c   : > { %3347 = dma.hbm_to_vmem [thread:$0]  (!%p3638_p5), %s4205_s3, 24576, %s241_s13, [#allocation6], %s3571_s28, %s3571_s28, %s3572_s30  }
  0x3d   : > { %s3573_s10 = smov [#allocation10]  }
  0x3e   : > { %s264_s12 = sshll.u32 %s3573_s10, 4  ;;  %s265_s12 = int_to_ptr.vmem [resolvable:$true] %s264_s12 }
  0x3f   : > { %s3530_s15 = scalar_lea.vmem %s265_s12, 24576  ;;  %p3538_p13 = scmp.lt.s32.totalorder %s265_s12, %s265_s12 }
  0x40   : > { %p3531_p11 = scmp.ne.s32.totalorder %s265_s12, %s3530_s15  ;;  %p3539_p3 = scmp.lt.s32.totalorder %s3530_s15, %s3530_s15 }
  0x42   : > { %p3533_p12 = pnand %p3531_p11, %p3648_p6  ;;  %p3540_p0 = por %p3539_p3, %p3538_p13 }
  0x44   : > { %p3534_p2 = pneg %p3533_p12 }
  0x46   : > { %p3541_p1 = pnand %p3540_p0, %p3534_p2 }
  0x48   : > { %3544 = shalt.err (!%p3541_p1)
}
  0x49   : > { %s3574_s16 = smov 8   ;;  %p4215_p4 = scmp.ne.s32.totalorder %s4212_s6, 0 }
  0x4a   : > { %3353 = dma.hbm_to_vmem [thread:$0]  (!%p3638_p5), %s4207_s5, 24576, %s265_s12, [#allocation9], %s3570_s23, %s3570_s23, %s3574_s16  }
  0x4b   : > { %290 = sbr.rel (%p4215_p4) target bundleno = 907 (0x38b), region = 48  ;;  %p4216_p6 = scmp.eq.s32.totalorder (!%p4215_p4), %s3625_s29, 0 }
  0x50   : > { %3550 = dma.done.wait (%p4216_p6), [#allocation4], 4096   ;;  %p4217_p7 = pmov %p4216_p6 }
  0x51   : > { %p4218_p8 = pmov %p4216_p6 }
  0x52   : > { %3552 = vsyncadd (%p4217_p7), [#allocation4], 4294963200 }
  0x53   : > { %3554 = dma.done.wait (%p4218_p8), [#allocation6], 24832   ;;  %p4219_p9 = pmov %p4216_p6 }
  0x54   : > { %p4220_p10 = pmov %p4216_p6 }
  0x55   : > { %3556 = vsyncadd (%p4219_p9), [#allocation6], 4294942464 }
  0x56   : > { %3558 = dma.done.wait (%p4220_p10), [#allocation9], 24640   ;;  %p4221_p5 = pmov %p4216_p6 }
  0x57   : > { %p337_p11 = scmp.lt.s32.totalorder %s3625_s29, 1  ;;  %v3575_v0 = vmov 0.0   ;;  %vm467_vm0 = vcmask 1041408   ;;  %v364_v1 = vld [vmem:[#allocation3 + $0x88] sm:$0x3]  ;;  %v350_v6 = vld [vmem:[#allocation3 + $0x18] sm:$0xff] }
  0x58   : > { %3560 = vsyncadd (%p4221_p5), [#allocation9], 4294942656  ;;  %580 = vmatprep.mubr.f32.mxu0 %v3575_v0  ;;  %651 = vmatprep.mubr.f32.mxu1 %v3575_v0  ;;  %v366_v2 = vld [vmem:[#allocation3 + $0x98] sm:$0x3]  ;;  %v363_v3 = vld [vmem:[#allocation3 + $0x80] sm:$0x3] }
  0x59   : > { %s4223_s29 = smov (!%p337_p11, %s3625_s29), 1  ;;  %3003 = vmatprep.subr.msk.mxu0 %vm467_vm0, %v364_v1  ;;  %3006 = vmatprep.subr.msk.mxu1 %vm467_vm0, %v366_v2  ;;  %v365_v4 = vld [vmem:[#allocation3 + $0x90] sm:$0x3]  ;;  %v348_v5 = vld [vmem:[#allocation3 + $0x8] sm:$0xff]  ;;  %v347_v7 = vld [vmem:[#allocation3] sm:$0xff]  ;;  %vm463_vm1 = vcmask 80896  }
  0x5a   : > { %s3000_s6 = sshll.u32 %s4223_s29, 1  ;;  %3004 = vmatpush1.msk.msra.mxu0 %vm467_vm0, %v363_v3  ;;  %3007 = vmatpush1.msk.msra.mxu1 %vm467_vm0, %v365_v4  ;;  %v349_v8 = vld [vmem:[#allocation3 + $0x10] sm:$0xff]  ;;  %v368_v10 = vld [vmem:[#allocation3 + $0xa8] sm:$0x3]  ;;  %v367_v11 = vld [vmem:[#allocation3 + $0xa0] sm:$0x3] }
  0x5b   : > { %s340_s18 = scalar_lea.vmem %s4202_s0, %s3000_s6  ;;  %546 = vmatprep.subr.mxu0 %v348_v5  ;;  %617 = vmatprep.subr.mxu1 %v350_v6  ;;  %v370_v12 = vld [vmem:[#allocation3 + $0xb8] sm:$0x3]  ;;  %v352_v13 = vld [vmem:[#allocation3 + $0x28] sm:$0xff]  ;;  %v369_v14 = vld [vmem:[#allocation3 + $0xb0] sm:$0x3]  ;;  %vm1137_vm2 = vcmask 1043456  }
  0x5c   : > { %v3724_v9 = vld [vmem:[%s340_s18] sm:$0x3]  ;;  %547 = vmatpush1.msra.mxu0 %v347_v7  ;;  %618 = vmatpush1.msra.mxu1 %v349_v8  ;;  %v354_v16 = vld [vmem:[#allocation3 + $0x38] sm:$0xff]  ;;  %v353_v17 = vld [vmem:[#allocation3 + $0x30] sm:$0xff]  ;;  %vm1139_vm3 = vcmask 1045504   ;;  %s2461_s19 = sld [smem:[#allocation2]] }
  0x5d   : > { %3005 = vmatmul.mubr.msk.f32.vlgmr.msra.gmra.mxu0 %vm463_vm1, %v3724_v9  ;;  %3008 = vmatmul.mubr.msk.f32.vlgmr.msra.gmra.mxu1 %vm463_vm1, %v3724_v9  ;;  %v351_v15 = vld [vmem:[#allocation3 + $0x20] sm:$0xff]  ;;  %v372_v18 = vld [vmem:[#allocation3 + $0xc8] sm:$0x3]  ;;  %v374_v21 = vld [vmem:[#allocation3 + $0xd8] sm:$0x3]  ;;  %s3053_s20 = sshll.u32 %s4223_s29, 6 }
  0x5e   : > { %3009 = vmatprep.subr.msk.mxu0 %vm467_vm0, %v368_v10  ;;  %3012 = vmatprep.subr.msk.mxu1 %vm467_vm0, %v370_v12  ;;  %v371_v19 = vld [vmem:[#allocation3 + $0xc0] sm:$0x3]  ;;  %v356_v20 = vld [vmem:[#allocation3 + $0x48] sm:$0xff]  ;;  %v373_v23 = vld [vmem:[#allocation3 + $0xd0] sm:$0x3]  ;;  %s4177_s23 = scalar_lea.vmem %s4209_s7, %s3053_s20 }
  0x5f   : > { %3010 = vmatpush1.msk.msra.mxu0 %vm467_vm0, %v367_v11  ;;  %722 = vmatprep.mubr.f32.mxu0 %v3575_v0  ;;  %v355_v22 = vld [vmem:[#allocation3 + $0x40] sm:$0xff]  ;;  %v358_v24 = vld [vmem:[#allocation3 + $0x58] sm:$0xff]  ;;  %v376_v25 = vld [vmem:[#allocation3 + $0xe8] sm:$0x3] }
  0x60   : > { %688 = vmatprep.subr.mxu0 %v352_v13  ;;  %3013 = vmatpush1.msk.msra.mxu1 %vm467_vm0, %v369_v14  ;;  %v357_v26 = vld [vmem:[#allocation3 + $0x50] sm:$0xff]  ;;  %v375_v27 = vld [vmem:[#allocation3 + $0xe0] sm:$0x3]  ;;  %v360_v28 = vld [vmem:[#allocation3 + $0x68] sm:$0xff] }
  0x61   : > { %689 = vmatpush1.msra.mxu0 %v351_v15  ;;  %759 = vmatprep.subr.mxu1 %v354_v16  ;;  %v378_v29 = vld [vmem:[#allocation3 + $0xf8] sm:$0x3]  ;;  %v359_v30 = vld [vmem:[#allocation3 + $0x60] sm:$0xff]  ;;  %v377_v31 = vld [vmem:[#allocation3 + $0xf0] sm:$0x3] }
  0x62   : > { %3011 = vmatmul.mubr.msk.f32.vlgmr.msra.gmra.mxu0 %vm463_vm1, %v3724_v9  ;;  %760 = vmatpush1.msra.mxu1 %v353_v17  ;;  %v362_v32 = vld [vmem:[#allocation3 + $0x78] sm:$0xff]  ;;  %v361_v33 = vld [vmem:[#allocation3 + $0x70] sm:$0xff]  ;;  %v1277_v35 = vld [vmem:[#allocation7 + $0x3f8] sm:$0xff] }
  0x63   : > { %793 = vmatprep.mubr.f32.mxu1 %v3575_v0  ;;  %3015 = vmatprep.subr.msk.mxu0 %vm467_vm0, %v372_v18  ;;  %v1275_v34 = vld [vmem:[#allocation7 + $0x3e8] sm:$0xff]  ;;  %v1274_v36 = vld [vmem:[#allocation7 + $0x3e0] sm:$0xff]  ;;  %v1276_v37 = vld [vmem:[#allocation7 + $0x3f0] sm:$0xff] }
  0x64   : > { %3014 = vmatmul.mubr.msk.f32.vlgmr.msra.gmra.mxu1 %vm463_vm1, %v3724_v9  ;;  %3016 = vmatpush1.msk.msra.mxu0 %vm467_vm0, %v371_v19  ;;  %v1271_v38 = vld [vmem:[#allocation7 + $0x3c8] sm:$0xff]  ;;  %v1273_v39 = vld [vmem:[#allocation7 + $0x3d8] sm:$0xff]  ;;  %v1270_v40 = vld [vmem:[#allocation7 + $0x3c0] sm:$0xff] }
  0x65   : > { %830 = vmatprep.subr.mxu0 %v356_v20  ;;  %3018 = vmatprep.subr.msk.mxu1 %vm467_vm0, %v374_v21  ;;  %v1272_v41 = vld [vmem:[#allocation7 + $0x3d0] sm:$0xff]  ;;  %v1267_v42 = vld [vmem:[#allocation7 + $0x3a8] sm:$0xff]  ;;  %v1269_v43 = vld [vmem:[#allocation7 + $0x3b8] sm:$0xff] }
  0x66   : > { %831 = vmatpush1.msra.mxu0 %v355_v22  ;;  %864 = vmatprep.mubr.f32.mxu0 %v3575_v0  ;;  %v1266_v44 = vld [vmem:[#allocation7 + $0x3a0] sm:$0xff]  ;;  %v1268_v45 = vld [vmem:[#allocation7 + $0x3b0] sm:$0xff]  ;;  %v1263_v46 = vld [vmem:[#allocation7 + $0x388] sm:$0xff] }
  0x67   : > { %3019 = vmatpush1.msk.msra.mxu1 %vm467_vm0, %v373_v23  ;;  %3017 = vmatmul.mubr.msk.f32.vlgmr.msra.gmra.mxu0 %vm463_vm1, %v3724_v9  ;;  %v1265_v47 = vld [vmem:[#allocation7 + $0x398] sm:$0xff]  ;;  %v1262_v48 = vld [vmem:[#allocation7 + $0x380] sm:$0xff]  ;;  %v1264_v49 = vld [vmem:[#allocation7 + $0x390] sm:$0xff] }
  0x68   : > { %901 = vmatprep.subr.mxu1 %v358_v24  ;;  %3021 = vmatprep.subr.msk.mxu0 %vm467_vm0, %v376_v25  ;;  %v1259_v50 = vld [vmem:[#allocation7 + $0x368] sm:$0xff]  ;;  %v1261_v51 = vld [vmem:[#allocation7 + $0x378] sm:$0xff]  ;;  %v1258_v52 = vld [vmem:[#allocation7 + $0x360] sm:$0xff] }
  0x69   : > { %902 = vmatpush1.msra.mxu1 %v357_v26  ;;  %935 = vmatprep.mubr.f32.mxu1 %v3575_v0  ;;  %v1260_v53 = vld [vmem:[#allocation7 + $0x370] sm:$0xff]  ;;  %v1255_v54 = vld [vmem:[#allocation7 + $0x348] sm:$0xff]  ;;  %v1257_v55 = vld [vmem:[#allocation7 + $0x358] sm:$0xff] }
  0x6a   : > { %3022 = vmatpush1.msk.msra.mxu0 %vm467_vm0, %v375_v27  ;;  %3020 = vmatmul.mubr.msk.f32.vlgmr.msra.gmra.mxu1 %vm463_vm1, %v3724_v9  ;;  %v1254_v56 = vld [vmem:[#allocation7 + $0x340] sm:$0xff]  ;;  %v1256_v57 = vld [vmem:[#allocation7 + $0x350] sm:$0xff]  ;;  %v1251_v58 = vld [vmem:[#allocation7 + $0x328] sm:$0xff] }
  0x6b   : > { %972 = vmatprep.subr.mxu0 %v360_v28  ;;  %3024 = vmatprep.subr.msk.mxu1 %vm467_vm0, %v378_v29  ;;  %v1253_v59 = vld [vmem:[#allocation7 + $0x338] sm:$0xff]  ;;  %v1250_v60 = vld [vmem:[#allocation7 + $0x320] sm:$0xff]  ;;  %v1252_v61 = vld [vmem:[#allocation7 + $0x330] sm:$0xff] }
  0x6c   : > { %973 = vmatpush1.msra.mxu0 %v359_v30  ;;  %1006 = vmatprep.mubr.f32.mxu0 %v3575_v0  ;;  %v1247_v62 = vld [vmem:[#allocation7 + $0x308] sm:$0xff]  ;;  %v1249_v63 = vld [vmem:[#allocation7 + $0x318] sm:$0xff]  ;;  %v1246_v1 = vld [vmem:[#allocation7 + $0x300] sm:$0xff] }
  0x6d   : > { %3025 = vmatpush1.msk.msra.mxu1 %vm467_vm0, %v377_v31  ;;  %3023 = vmatmul.mubr.msk.f32.vlgmr.msra.gmra.mxu0 %vm463_vm1, %v3724_v9  ;;  %v1248_v2 = vld [vmem:[#allocation7 + $0x310] sm:$0xff]  ;;  %v1243_v3 = vld [vmem:[#allocation7 + $0x2e8] sm:$0xff]  ;;  %v1245_v4 = vld [vmem:[#allocation7 + $0x2f8] sm:$0xff] }
  0x6e   : > { %1043 = vmatprep.subr.mxu1 %v362_v32  ;;  %1077 = vmatprep.mubr.f32.mxu1 %v3575_v0  ;;  %v1242_v5 = vld [vmem:[#allocation7 + $0x2e0] sm:$0xff]  ;;  %v1244_v6 = vld [vmem:[#allocation7 + $0x2f0] sm:$0xff]  ;;  %v1239_v7 = vld [vmem:[#allocation7 + $0x2c8] sm:$0xff] }
  0x6f   : > { %1044 = vmatpush1.msra.mxu1 %v361_v33  ;;  %1278 = vmatprep.subr.mxu0 %v1275_v34  ;;  %v1241_v8 = vld [vmem:[#allocation7 + $0x2d8] sm:$0xff]  ;;  %v1240_v10 = vld [vmem:[#allocation7 + $0x2d0] sm:$0xff]  ;;  %v1235_v11 = vld [vmem:[#allocation7 + $0x2a8] sm:$0xff] }
  0x70   : > { %3026 = vmatmul.mubr.msk.f32.vlgmr.msra.gmra.mxu1 %vm463_vm1, %v3724_v9  ;;  %1367 = vmatprep.subr.mxu1 %v1277_v35  ;;  %v1238_v9 = vld [vmem:[#allocation7 + $0x2c0] sm:$0xff]  ;;  %v1237_v12 = vld [vmem:[#allocation7 + $0x2b8] sm:$0xff]  ;;  %v1236_v14 = vld [vmem:[#allocation7 + $0x2b0] sm:$0xff] }
  0x71   : > { %1279 = vmatpush1.msra.mxu0 %v1274_v36  ;;  %1368 = vmatpush1.msra.mxu1 %v1276_v37  ;;  %v1234_v13 = vld [vmem:[#allocation7 + $0x2a0] sm:$0xff]  ;;  %v1231_v15 = vld [vmem:[#allocation7 + $0x288] sm:$0xff]  ;;  %v1233_v16 = vld [vmem:[#allocation7 + $0x298] sm:$0xff]  ;;  %v383_v37 = vlaneseq }
  0x72   : > { %1280 = vmatprep.subr.mxu0 %v1271_v38  ;;  %1369 = vmatprep.subr.mxu1 %v1273_v39  ;;  %v1230_v17 = vld [vmem:[#allocation7 + $0x280] sm:$0xff]  ;;  %v1232_v18 = vld [vmem:[#allocation7 + $0x290] sm:$0xff]  ;;  %v1227_v19 = vld [vmem:[#allocation7 + $0x268] sm:$0xff] }
  0x73   : > { %1281 = vmatpush1.msra.mxu0 %v1270_v40  ;;  %1370 = vmatpush1.msra.mxu1 %v1272_v41  ;;  %v1229_v20 = vld [vmem:[#allocation7 + $0x278] sm:$0xff]  ;;  %v1226_v21 = vld [vmem:[#allocation7 + $0x260] sm:$0xff]  ;;  %v1228_v22 = vld [vmem:[#allocation7 + $0x270] sm:$0xff]  ;;  %v3762_v38 = vshrl.u32 %v383_v37, 7 }
  0x74   : > { %1282 = vmatprep.subr.mxu0 %v1267_v42  ;;  %1371 = vmatprep.subr.mxu1 %v1269_v43  ;;  %v1223_v23 = vld [vmem:[#allocation7 + $0x248] sm:$0xff]  ;;  %v1225_v24 = vld [vmem:[#allocation7 + $0x258] sm:$0xff]  ;;  %v1222_v25 = vld [vmem:[#allocation7 + $0x240] sm:$0xff] }
  0x75   : > { %1283 = vmatpush1.msra.mxu0 %v1266_v44  ;;  %1372 = vmatpush1.msra.mxu1 %v1268_v45  ;;  %v1224_v26 = vld [vmem:[#allocation7 + $0x250] sm:$0xff]  ;;  %v1219_v27 = vld [vmem:[#allocation7 + $0x228] sm:$0xff]  ;;  %v1221_v28 = vld [vmem:[#allocation7 + $0x238] sm:$0xff]  ;;  %v3765_v39 = vsub.s32 2, %v3762_v38  ;;  %v3768_v40 = vsub.s32 0, %v3762_v38  ;;  %v3771_v41 = vsub.s32 1, %v3762_v38 }
  0x76   : > { %1284 = vmatprep.subr.mxu0 %v1263_v46  ;;  %1373 = vmatprep.subr.mxu1 %v1265_v47  ;;  %v1218_v29 = vld [vmem:[#allocation7 + $0x220] sm:$0xff]  ;;  %v1220_v30 = vld [vmem:[#allocation7 + $0x230] sm:$0xff]  ;;  %v1215_v31 = vld [vmem:[#allocation7 + $0x208] sm:$0xff]  ;;  %v3774_v42 = vsub.s32 3, %v3762_v38  ;;  %v401_v45 = vsub.s32 4, %v3762_v38 }
  0x77   : > { %1285 = vmatpush1.msra.mxu0 %v1262_v48  ;;  %1374 = vmatpush1.msra.mxu1 %v1264_v49  ;;  %v1217_v32 = vld [vmem:[#allocation7 + $0x218] sm:$0xff]  ;;  %v1214_v33 = vld [vmem:[#allocation7 + $0x200] sm:$0xff]  ;;  %v1216_v34 = vld [vmem:[#allocation7 + $0x210] sm:$0xff] }
  0x78   : > { %1286 = vmatprep.subr.mxu0 %v1259_v50  ;;  %1375 = vmatprep.subr.mxu1 %v1261_v51  ;;  %v1517_v35 = vld [vmem:[#allocation7 + $0x5e8] sm:$0xff]  ;;  %v1519_v36 = vld [vmem:[#allocation7 + $0x5f8] sm:$0xff]  ;;  %v379_v43 = vld [vmem:[#allocation5] sm:$0xff]  ;;  %v405_v51 = vsub.s32 5, %v3762_v38 }
  0x79   : > { %1287 = vmatpush1.msra.mxu0 %v1258_v52  ;;  %1376 = vmatpush1.msra.mxu1 %v1260_v53  ;;  %v394_v44 = vrot.slane %v379_v43, %v3765_v39  ;;  %v386_v46 = vrot.slane %v379_v43, %v3768_v40  ;;  %v390_v47 = vrot.slane %v379_v43, %v3771_v41  ;;  %v409_v52 = vsub.s32 6, %v3762_v38 }
  0x7a   : > { %1288 = vmatprep.subr.mxu0 %v1255_v54  ;;  %1377 = vmatprep.subr.mxu1 %v1257_v55  ;;  %v398_v48 = vrot.slane %v379_v43, %v3774_v42 }
  0x7b   : > { %1289 = vmatpush1.msra.mxu0 %v1254_v56  ;;  %1378 = vmatpush1.msra.mxu1 %v1256_v57  ;;  %v402_v56 = vrot.slane %v379_v43, %v401_v45  ;;  %v413_v57 = vsub.s32 7, %v3762_v38 }
  0x7c   : > { %1290 = vmatprep.subr.mxu0 %v1251_v58  ;;  %1379 = vmatprep.subr.mxu1 %v1253_v59 }
  0x7d   : > { %1291 = vmatpush1.msra.mxu0 %v1250_v60  ;;  %1380 = vmatpush1.msra.mxu1 %v1252_v61 }
  0x7e   : > { %1292 = vmatprep.subr.mxu0 %v1247_v62  ;;  %1381 = vmatprep.subr.mxu1 %v1249_v63  ;;  %v406_v62 = vrot.slane %v379_v43, %v405_v51  ;;  %v410_v63 = vrot.slane %v379_v43, %v409_v52 }
  0x7f   : > { %1293 = vmatpush1.msra.mxu0 %v1246_v1  ;;  %1382 = vmatpush1.msra.mxu1 %v1248_v2 }
  0x80   : > { %1294 = vmatprep.subr.mxu0 %v1243_v3  ;;  %1383 = vmatprep.subr.mxu1 %v1245_v4  ;;  %v3790_v4 = vld [vmem:[#allocation5 + $0x8] sm:$0xff] }
  0x81   : > { %1295 = vmatpush1.msra.mxu0 %v1242_v5  ;;  %1384 = vmatpush1.msra.mxu1 %v1244_v6  ;;  %v430_v37 = vrot.slane %v3790_v4, %v3774_v42 }
  0x82   : > { %1296 = vmatprep.subr.mxu0 %v1239_v7  ;;  %1385 = vmatprep.subr.mxu1 %v1241_v8  ;;  %v414_v7 = vrot.slane %v379_v43, %v413_v57 }
  0x83   : > { %1297 = vmatpush1.msra.mxu0 %v1238_v9  ;;  %1386 = vmatpush1.msra.mxu1 %v1240_v10 }
  0x84   : > { %1298 = vmatprep.subr.mxu0 %v1235_v11  ;;  %1387 = vmatprep.subr.mxu1 %v1237_v12 }
  0x85   : > { %1342 = vmatprep.mubr.f32.mxu0 %v3575_v0  ;;  %1431 = vmatprep.mubr.f32.mxu1 %v3575_v0 }
  0x86   : > { %1299 = vmatpush1.msra.mxu0 %v1234_v13  ;;  %1388 = vmatpush1.msra.mxu1 %v1236_v14  ;;  %v418_v14 = vrot.slane %v3790_v4, %v3768_v40 }
  0x87   : > { %1300 = vmatprep.subr.mxu0 %v1231_v15  ;;  %1389 = vmatprep.subr.mxu1 %v1233_v16  ;;  %v422_v15 = vrot.slane %v3790_v4, %v3771_v41 }
  0x88   : > { %1301 = vmatpush1.msra.mxu0 %v1230_v17  ;;  %1390 = vmatpush1.msra.mxu1 %v1232_v18 }
  0x89   : > { %1302 = vmatprep.subr.mxu0 %v1227_v19  ;;  %1391 = vmatprep.subr.mxu1 %v1229_v20  ;;  %v426_v20 = vrot.slane %v3790_v4, %v3765_v39 }
  0x8a   : > { %1303 = vmatpush1.msra.mxu0 %v1226_v21  ;;  %1392 = vmatpush1.msra.mxu1 %v1228_v22 }
  0x8b   : > { %1304 = vmatprep.subr.mxu0 %v1223_v23  ;;  %1393 = vmatprep.subr.mxu1 %v1225_v24 }
  0x8c   : > { %1305 = vmatpush1.msra.mxu0 %v1222_v25  ;;  %1394 = vmatpush1.msra.mxu1 %v1224_v26  ;;  %v1516_v25 = vld [vmem:[#allocation7 + $0x5e0] sm:$0xff]  ;;  %v1518_v26 = vld [vmem:[#allocation7 + $0x5f0] sm:$0xff] }
  0x8d   : > { %1306 = vmatprep.subr.mxu0 %v1219_v27  ;;  %1395 = vmatprep.subr.mxu1 %v1221_v28 }
  0x8e   : > { %1307 = vmatpush1.msra.mxu0 %v1218_v29  ;;  %1396 = vmatpush1.msra.mxu1 %v1220_v30  ;;  %v1513_v29 = vld [vmem:[#allocation7 + $0x5c8] sm:$0xff]  ;;  %v1515_v30 = vld [vmem:[#allocation7 + $0x5d8] sm:$0xff] }
  0x8f   : > { %1308 = vmatprep.subr.mxu0 %v1215_v31  ;;  %1397 = vmatprep.subr.mxu1 %v1217_v32 }
  0x90   : > { %1309 = vmatpush1.msra.mxu0 %v1214_v33  ;;  %1398 = vmatpush1.msra.mxu1 %v1216_v34  ;;  %v1512_v34 = vld [vmem:[#allocation7 + $0x5c0] sm:$0xff] }
  0x91   : > { %1520 = vmatprep.subr.mxu0 %v1517_v35  ;;  %1609 = vmatprep.subr.mxu1 %v1519_v36  ;;  %v1514_v35 = vld [vmem:[#allocation7 + $0x5d0] sm:$0xff] }
 0x11d   : > { %v582_v49 = vpop.f32.mrf.mxu0  ;;  %v653_v50 = vpop.f32.mrf.mxu1 }
 0x11e   : > { %v654_v53 = vadd.f32 %v653_v50, %v394_v44  ;;  %v583_v58 = vadd.f32 %v582_v49, %v386_v46  ;;  %v1509_v49 = vld [vmem:[#allocation7 + $0x5a8] sm:$0xff]  ;;  %v1511_v50 = vld [vmem:[#allocation7 + $0x5b8] sm:$0xff] }
 0x11f   : > { %v584_v54 = vpop.f32.mrf.mxu0  ;;  %v655_v55 = vpop.f32.mrf.mxu1 }
 0x120   : > { %v1086_v59 = vmax.f32 %v654_v53, 0.0  ;;  %v585_v60 = vadd.f32 %v584_v54, %v390_v47  ;;  %v656_v61 = vadd.f32 %v655_v55, %v398_v48  ;;  %v1084_v8 = vmax.f32 %v583_v58, 0.0 }
 0x121   : > { %v434_v58 = vrot.slane %v3790_v4, %v401_v45  ;;  %v442_v45 = vrot.slane %v3790_v4, %v409_v52 }
 0x122   : > { %v1085_v1 = vmax.f32 %v585_v60, 0.0  ;;  %v1087_v2 = vmax.f32 %v656_v61, 0.0  ;;  %v724_v3 = vpop.f32.mrf.mxu0  ;;  %v1104_v5 = vrot.slane %v1086_v59, 4  ;;  %v438_v59 = vrot.slane %v3790_v4, %v405_v51 }
 0x123   : > { %v725_v6 = vadd.f32 %v724_v3, %v402_v56 }
 0x124   : > { %v1101_v9 = vrot.slane %v1085_v1, 6  ;;  %v726_v10 = vpop.f32.mrf.mxu0  ;;  %v795_v11 = vpop.f32.mrf.mxu1  ;;  %v1107_v17 = vrot.slane %v1087_v2, 2 }
 0x125   : > { %v727_v12 = vadd.f32 %v726_v10, %v406_v62  ;;  %v796_v13 = vadd.f32 %v795_v11, %v410_v63  ;;  %v1088_v18 = vmax.f32 %v725_v6, 0.0  ;;  %v1508_v62 = vld [vmem:[#allocation7 + $0x5a0] sm:$0xff]  ;;  %v1510_v63 = vld [vmem:[#allocation7 + $0x5b0] sm:$0xff]  ;;  %v1507_v6 = vld [vmem:[#allocation7 + $0x598] sm:$0xff]  ;;  %v446_v10 = vrot.slane %v3790_v4, %v413_v57 }
 0x126   : > { %v1136_v16 = vsel %vm467_vm0, %v1084_v8, %v1101_v9  ;;  %v797_v19 = vpop.f32.mrf.mxu1  ;;  %v1506_v8 = vld [vmem:[#allocation7 + $0x590] sm:$0xff]  ;;  %v1497_v57 = vld [vmem:[#allocation7 + $0x548] sm:$0xff]  ;;  %v1499_v4 = vld [vmem:[#allocation7 + $0x558] sm:$0xff] }
 0x127   : > { %v1138_v21 = vsel %vm1137_vm2, %v1136_v16, %v1104_v5  ;;  %v1089_v22 = vmax.f32 %v727_v12, 0.0  ;;  %v1090_v23 = vmax.f32 %v796_v13, 0.0  ;;  %v798_v24 = vadd.f32 %v797_v19, %v414_v7  ;;  %v866_v27 = vpop.f32.mrf.mxu0  ;;  %v1505_v5 = vld [vmem:[#allocation7 + $0x588] sm:$0xff]  ;;  %v1504_v7 = vld [vmem:[#allocation7 + $0x580] sm:$0xff]  ;;  %v1503_v13 = vld [vmem:[#allocation7 + $0x578] sm:$0xff] }
 0x128   : > { %v3803_v28 = vsel %vm1139_vm3, %v1138_v21, %v1107_v17  ;;  %v867_v43 = vadd.f32 %v866_v27, %v418_v14  ;;  %v1501_v12 = vld [vmem:[#allocation7 + $0x568] sm:$0xff]  ;;  %v1502_v19 = vld [vmem:[#allocation7 + $0x570] sm:$0xff] }
 0x129   : > { %v1110_v31 = vrot.slane %v1089_v22, 6  ;;  %v1113_v32 = vrot.slane %v1090_v23, 4  ;;  %v1091_v33 = vmax.f32 %v798_v24, 0.0  ;;  %1343 = vmatmul.mubr.f32.vlgmr.msra.gmra.mxu0 %v3803_v28  ;;  %1432 = vmatmul.mubr.f32.vlgmr.msra.gmra.mxu1 %v3803_v28  ;;  %v868_v36 = vpop.f32.mrf.mxu0 }
 0x12a   : > { %1521 = vmatpush1.msra.mxu0 %v1516_v25  ;;  %1610 = vmatpush1.msra.mxu1 %v1518_v26  ;;  %v869_v44 = vadd.f32 %v868_v36, %v422_v15  ;;  %v937_v46 = vpop.f32.mrf.mxu1  ;;  %v1092_v3 = vmax.f32 %v867_v43, 0.0  ;;  %v1496_v25 = vld [vmem:[#allocation7 + $0x540] sm:$0xff]  ;;  %v1498_v26 = vld [vmem:[#allocation7 + $0x550] sm:$0xff]  ;;  %v1489_v43 = vld [vmem:[#allocation7 + $0x508] sm:$0xff] }
 0x12b   : > { %v1141_v47 = vsel %vm467_vm0, %v1088_v18, %v1110_v31  ;;  %v1116_v48 = vrot.slane %v1091_v33, 2  ;;  %1522 = vmatprep.subr.mxu0 %v1513_v29  ;;  %1611 = vmatprep.subr.mxu1 %v1515_v30  ;;  %v938_v53 = vadd.f32 %v937_v46, %v426_v20  ;;  %v1500_v18 = vld [vmem:[#allocation7 + $0x560] sm:$0xff]  ;;  %v1493_v31 = vld [vmem:[#allocation7 + $0x528] sm:$0xff] }
 0x12c   : > { %v1142_v54 = vsel %vm1137_vm2, %v1141_v47, %v1113_v32  ;;  %1523 = vmatpush1.msra.mxu0 %v1512_v34  ;;  %1612 = vmatpush1.msra.mxu1 %v1514_v35  ;;  %v1093_v55 = vmax.f32 %v869_v44, 0.0  ;;  %v939_v56 = vpop.f32.mrf.mxu1  ;;  %v1495_v32 = vld [vmem:[#allocation7 + $0x538] sm:$0xff]  ;;  %v1492_v34 = vld [vmem:[#allocation7 + $0x520] sm:$0xff]  ;;  %v1494_v35 = vld [vmem:[#allocation7 + $0x530] sm:$0xff] }
 0x12d   : > { %v3818_v60 = vsel %vm1139_vm3, %v1142_v54, %v1116_v48  ;;  %1348 = vmatprep.mubr.f32.mxu0 %v3575_v0  ;;  %1437 = vmatprep.mubr.f32.mxu1 %v3575_v0  ;;  %v1094_v61 = vmax.f32 %v938_v53, 0.0  ;;  %v940_v1 = vadd.f32 %v939_v56, %v430_v37  ;;  %v1008_v2 = vpop.f32.mrf.mxu0  ;;  %v1491_v44 = vld [vmem:[#allocation7 + $0x518] sm:$0xff]  ;;  %v1488_v48 = vld [vmem:[#allocation7 + $0x500] sm:$0xff]  ;;  %v1485_v53 = vld [vmem:[#allocation7 + $0x4e8] sm:$0xff] }
 0x12e   : > { %1524 = vmatprep.subr.mxu0 %v1509_v49  ;;  %1613 = vmatprep.subr.mxu1 %v1511_v50  ;;  %v1119_v51 = vrot.slane %v1093_v55, 6  ;;  %v1009_v11 = vadd.f32 %v1008_v2, %v434_v58  ;;  %v1490_v49 = vld [vmem:[#allocation7 + $0x510] sm:$0xff]  ;;  %v1487_v54 = vld [vmem:[#allocation7 + $0x4f8] sm:$0xff]  ;;  %v1484_v56 = vld [vmem:[#allocation7 + $0x4e0] sm:$0xff] }
 0x12f   : > { %1349 = vmatmul.mubr.f32.gmra.mxu0 %v3818_v60  ;;  %1438 = vmatmul.mubr.f32.gmra.mxu1 %v3818_v60  ;;  %v1010_v9 = vpop.f32.mrf.mxu0  ;;  %v1095_v52 = vmax.f32 %v940_v1, 0.0  ;;  %v1122_v16 = vrot.slane %v1094_v61, 4  ;;  %v1486_v58 = vld [vmem:[#allocation7 + $0x4f0] sm:$0xff]  ;;  %v1483_v61 = vld [vmem:[#allocation7 + $0x4d8] sm:$0xff]  ;;  %v1477_v2 = vld [vmem:[#allocation7 + $0x4a8] sm:$0xff] }
 0x130   : > { %1525 = vmatpush1.msra.mxu0 %v1508_v62  ;;  %1614 = vmatpush1.msra.mxu1 %v1510_v63  ;;  %v1011_v14 = vadd.f32 %v1010_v9, %v438_v59  ;;  %v1079_v15 = vpop.f32.mrf.mxu1  ;;  %v1144_v20 = vsel %vm467_vm0, %v1092_v3, %v1119_v51  ;;  %v1096_v29 = vmax.f32 %v1009_v11, 0.0  ;;  %v1481_v59 = vld [vmem:[#allocation7 + $0x4c8] sm:$0xff]  ;;  %v1480_v63 = vld [vmem:[#allocation7 + $0x4c0] sm:$0xff]  ;;  %v1482_v1 = vld [vmem:[#allocation7 + $0x4d0] sm:$0xff] }
 0x131   : > { %1526 = vmatprep.subr.mxu0 %v1505_v5  ;;  %1615 = vmatprep.subr.mxu1 %v1507_v6  ;;  %v1080_v17 = vadd.f32 %v1079_v15, %v442_v45  ;;  %v1125_v27 = vrot.slane %v1095_v52, 2  ;;  %v1145_v33 = vsel %vm1137_vm2, %v1144_v20, %v1122_v16  ;;  %v1479_v45 = vld [vmem:[#allocation7 + $0x4b8] sm:$0xff]  ;;  %v1476_v3 = vld [vmem:[#allocation7 + $0x4a0] sm:$0xff]  ;;  %v1478_v51 = vld [vmem:[#allocation7 + $0x4b0] sm:$0xff] }
 0x132   : > { %1527 = vmatpush1.msra.mxu0 %v1504_v7  ;;  %1616 = vmatpush1.msra.mxu1 %v1506_v8  ;;  %v1097_v21 = vmax.f32 %v1011_v14, 0.0  ;;  %v1081_v22 = vpop.f32.mrf.mxu1  ;;  %v1473_v5 = vld [vmem:[#allocation7 + $0x488] sm:$0xff]  ;;  %v1475_v6 = vld [vmem:[#allocation7 + $0x498] sm:$0xff]  ;;  %v1472_v7 = vld [vmem:[#allocation7 + $0x480] sm:$0xff] }
 0x133   : > { %1528 = vmatprep.subr.mxu0 %v1501_v12  ;;  %1617 = vmatprep.subr.mxu1 %v1503_v13  ;;  %v1098_v23 = vmax.f32 %v1080_v17, 0.0  ;;  %v1082_v24 = vadd.f32 %v1081_v22, %v446_v10  ;;  %v3833_v46 = vsel %vm1139_vm3, %v1145_v33, %v1125_v27  ;;  %v1474_v8 = vld [vmem:[#allocation7 + $0x490] sm:$0xff]  ;;  %v1469_v9 = vld [vmem:[#allocation7 + $0x468] sm:$0xff]  ;;  %v1471_v10 = vld [vmem:[#allocation7 + $0x478] sm:$0xff] }
 0x134   : > { %v1128_v30 = vrot.slane %v1097_v21, 6  ;;  %1529 = vmatpush1.msra.mxu0 %v1500_v18  ;;  %1618 = vmatpush1.msra.mxu1 %v1502_v19  ;;  %v1468_v52 = vld [vmem:[#allocation7 + $0x460] sm:$0xff]  ;;  %v1470_v11 = vld [vmem:[#allocation7 + $0x470] sm:$0xff]  ;;  %v1465_v12 = vld [vmem:[#allocation7 + $0x448] sm:$0xff] }
 0x135   : > { %1530 = vmatprep.subr.mxu0 %v1497_v57  ;;  %1619 = vmatprep.subr.mxu1 %v1499_v4  ;;  %v1099_v36 = vmax.f32 %v1082_v24, 0.0  ;;  %v1131_v37 = vrot.slane %v1098_v23, 4  ;;  %v1467_v13 = vld [vmem:[#allocation7 + $0x458] sm:$0xff]  ;;  %v1464_v14 = vld [vmem:[#allocation7 + $0x440] sm:$0xff]  ;;  %v1466_v15 = vld [vmem:[#allocation7 + $0x450] sm:$0xff] }
 0x136   : > { %1531 = vmatpush1.msra.mxu0 %v1496_v25  ;;  %1620 = vmatpush1.msra.mxu1 %v1498_v26  ;;  %v1147_v47 = vsel %vm467_vm0, %v1096_v29, %v1128_v30  ;;  %v1461_v16 = vld [vmem:[#allocation7 + $0x428] sm:$0xff]  ;;  %v1463_v17 = vld [vmem:[#allocation7 + $0x438] sm:$0xff]  ;;  %v1460_v18 = vld [vmem:[#allocation7 + $0x420] sm:$0xff] }
 0x137   : > { %1532 = vmatprep.subr.mxu0 %v1493_v31  ;;  %1621 = vmatprep.subr.mxu1 %v1495_v32  ;;  %v1134_v50 = vrot.slane %v1099_v36, 2  ;;  %v1148_v55 = vsel %vm1137_vm2, %v1147_v47, %v1131_v37  ;;  %v1462_v19 = vld [vmem:[#allocation7 + $0x430] sm:$0xff]  ;;  %v1457_v20 = vld [vmem:[#allocation7 + $0x408] sm:$0xff]  ;;  %v1459_v21 = vld [vmem:[#allocation7 + $0x418] sm:$0xff] }
 0x138   : > { %1533 = vmatpush1.msra.mxu0 %v1492_v34  ;;  %1622 = vmatpush1.msra.mxu1 %v1494_v35  ;;  %v1456_v57 = vld [vmem:[#allocation7 + $0x400] sm:$0xff]  ;;  %v1458_v4 = vld [vmem:[#allocation7 + $0x410] sm:$0xff]  ;;  %v1211_v22 = vld [vmem:[#allocation7 + $0x1e8] sm:$0xff] }
 0x139   : > { %1354 = vmatprep.mubr.f32.mxu0 %v3575_v0  ;;  %1443 = vmatprep.mubr.f32.mxu1 %v3575_v0  ;;  %v3842_v62 = vsel %vm1139_vm3, %v1148_v55, %v1134_v50  ;;  %v1213_v23 = vld [vmem:[#allocation7 + $0x1f8] sm:$0xff]  ;;  %v1210_v24 = vld [vmem:[#allocation7 + $0x1e0] sm:$0xff]  ;;  %v1212_v25 = vld [vmem:[#allocation7 + $0x1f0] sm:$0xff] }
 0x13a   : > { %1534 = vmatprep.subr.mxu0 %v1489_v43  ;;  %1623 = vmatprep.subr.mxu1 %v1491_v44  ;;  %v1207_v26 = vld [vmem:[#allocation7 + $0x1c8] sm:$0xff]  ;;  %v1209_v27 = vld [vmem:[#allocation7 + $0x1d8] sm:$0xff]  ;;  %v1206_v29 = vld [vmem:[#allocation7 + $0x1c0] sm:$0xff] }
 0x13b   : > { %1355 = vmatmul.mubr.f32.gmra.mxu0 %v3833_v46  ;;  %1444 = vmatmul.mubr.f32.gmra.mxu1 %v3833_v46  ;;  %v1208_v30 = vld [vmem:[#allocation7 + $0x1d0] sm:$0xff]  ;;  %v1203_v31 = vld [vmem:[#allocation7 + $0x1a8] sm:$0xff]  ;;  %v1205_v32 = vld [vmem:[#allocation7 + $0x1b8] sm:$0xff] }
 0x13c   : > { %1535 = vmatpush1.msra.mxu0 %v1488_v48  ;;  %1624 = vmatpush1.msra.mxu1 %v1490_v49  ;;  %v1202_v33 = vld [vmem:[#allocation7 + $0x1a0] sm:$0xff]  ;;  %v1204_v34 = vld [vmem:[#allocation7 + $0x1b0] sm:$0xff]  ;;  %v1199_v35 = vld [vmem:[#allocation7 + $0x188] sm:$0xff] }
 0x13d   : > { %1536 = vmatprep.subr.mxu0 %v1485_v53  ;;  %1625 = vmatprep.subr.mxu1 %v1487_v54  ;;  %v1201_v36 = vld [vmem:[#allocation7 + $0x198] sm:$0xff]  ;;  %v1198_v37 = vld [vmem:[#allocation7 + $0x180] sm:$0xff]  ;;  %v1200_v43 = vld [vmem:[#allocation7 + $0x190] sm:$0xff] }
 0x13e   : > { %1537 = vmatpush1.msra.mxu0 %v1484_v56  ;;  %1626 = vmatpush1.msra.mxu1 %v1486_v58  ;;  %v1195_v44 = vld [vmem:[#allocation7 + $0x168] sm:$0xff]  ;;  %v1197_v47 = vld [vmem:[#allocation7 + $0x178] sm:$0xff]  ;;  %v1194_v48 = vld [vmem:[#allocation7 + $0x160] sm:$0xff] }
 0x13f   : > { %1360 = vmatprep.mubr.f32.mxu0 %v3575_v0  ;;  %1449 = vmatprep.mubr.f32.mxu1 %v3575_v0  ;;  %v1196_v49 = vld [vmem:[#allocation7 + $0x170] sm:$0xff]  ;;  %v1191_v50 = vld [vmem:[#allocation7 + $0x148] sm:$0xff]  ;;  %v1193_v53 = vld [vmem:[#allocation7 + $0x158] sm:$0xff] }
 0x140   : > { %1538 = vmatprep.subr.mxu0 %v1481_v59  ;;  %1627 = vmatprep.subr.mxu1 %v1483_v61  ;;  %v1190_v54 = vld [vmem:[#allocation7 + $0x140] sm:$0xff]  ;;  %v1192_v55 = vld [vmem:[#allocation7 + $0x150] sm:$0xff]  ;;  %v1187_v56 = vld [vmem:[#allocation7 + $0x128] sm:$0xff] }
 0x141   : > { %1361 = vmatmul.mubr.f32.gmra.mxu0 %v3842_v62  ;;  %1450 = vmatmul.mubr.f32.gmra.mxu1 %v3842_v62  ;;  %v1189_v58 = vld [vmem:[#allocation7 + $0x138] sm:$0xff]  ;;  %v1186_v59 = vld [vmem:[#allocation7 + $0x120] sm:$0xff]  ;;  %v1188_v61 = vld [vmem:[#allocation7 + $0x130] sm:$0xff] }
 0x142   : > { %1539 = vmatpush1.msra.mxu0 %v1480_v63  ;;  %1628 = vmatpush1.msra.mxu1 %v1482_v1  ;;  %v1183_v63 = vld [vmem:[#allocation7 + $0x108] sm:$0xff]  ;;  %v1185_v1 = vld [vmem:[#allocation7 + $0x118] sm:$0xff] }
 0x143   : > { %1540 = vmatprep.subr.mxu0 %v1477_v2  ;;  %1629 = vmatprep.subr.mxu1 %v1479_v45  ;;  %v1182_v2 = vld [vmem:[#allocation7 + $0x100] sm:$0xff]  ;;  %v1184_v45 = vld [vmem:[#allocation7 + $0x110] sm:$0xff] }
 0x144   : > { %1541 = vmatpush1.msra.mxu0 %v1476_v3  ;;  %1630 = vmatpush1.msra.mxu1 %v1478_v51  ;;  %v1179_v3 = vld [vmem:[#allocation7 + $0xe8] sm:$0xff]  ;;  %v1181_v51 = vld [vmem:[#allocation7 + $0xf8] sm:$0xff] }
 0x145   : > { %1542 = vmatprep.subr.mxu0 %v1473_v5  ;;  %1631 = vmatprep.subr.mxu1 %v1475_v6  ;;  %v1178_v5 = vld [vmem:[#allocation7 + $0xe0] sm:$0xff]  ;;  %v1180_v6 = vld [vmem:[#allocation7 + $0xf0] sm:$0xff] }
 0x146   : > { %1543 = vmatpush1.msra.mxu0 %v1472_v7  ;;  %1632 = vmatpush1.msra.mxu1 %v1474_v8  ;;  %v1175_v7 = vld [vmem:[#allocation7 + $0xc8] sm:$0xff]  ;;  %v1177_v8 = vld [vmem:[#allocation7 + $0xd8] sm:$0xff] }
 0x147   : > { %1544 = vmatprep.subr.mxu0 %v1469_v9  ;;  %1633 = vmatprep.subr.mxu1 %v1471_v10  ;;  %v1174_v9 = vld [vmem:[#allocation7 + $0xc0] sm:$0xff]  ;;  %v1176_v10 = vld [vmem:[#allocation7 + $0xd0] sm:$0xff] }
 0x148   : > { %1545 = vmatpush1.msra.mxu0 %v1468_v52  ;;  %1634 = vmatpush1.msra.mxu1 %v1470_v11  ;;  %v1171_v52 = vld [vmem:[#allocation7 + $0xa8] sm:$0xff]  ;;  %v1173_v11 = vld [vmem:[#allocation7 + $0xb8] sm:$0xff] }
 0x149   : > { %1546 = vmatprep.subr.mxu0 %v1465_v12  ;;  %1635 = vmatprep.subr.mxu1 %v1467_v13  ;;  %v1170_v12 = vld [vmem:[#allocation7 + $0xa0] sm:$0xff]  ;;  %v1172_v13 = vld [vmem:[#allocation7 + $0xb0] sm:$0xff] }
 0x14a   : > { %1547 = vmatpush1.msra.mxu0 %v1464_v14  ;;  %1636 = vmatpush1.msra.mxu1 %v1466_v15  ;;  %v1167_v14 = vld [vmem:[#allocation7 + $0x88] sm:$0xff]  ;;  %v1169_v15 = vld [vmem:[#allocation7 + $0x98] sm:$0xff] }
 0x14b   : > { %1548 = vmatprep.subr.mxu0 %v1461_v16  ;;  %1637 = vmatprep.subr.mxu1 %v1463_v17  ;;  %v1166_v16 = vld [vmem:[#allocation7 + $0x80] sm:$0xff]  ;;  %v1168_v17 = vld [vmem:[#allocation7 + $0x90] sm:$0xff] }
 0x14c   : > { %1549 = vmatpush1.msra.mxu0 %v1460_v18  ;;  %1638 = vmatpush1.msra.mxu1 %v1462_v19  ;;  %v1163_v18 = vld [vmem:[#allocation7 + $0x68] sm:$0xff]  ;;  %v1165_v19 = vld [vmem:[#allocation7 + $0x78] sm:$0xff] }
 0x14d   : > { %1550 = vmatprep.subr.mxu0 %v1457_v20  ;;  %1639 = vmatprep.subr.mxu1 %v1459_v21  ;;  %v1162_v20 = vld [vmem:[#allocation7 + $0x60] sm:$0xff]  ;;  %v1164_v21 = vld [vmem:[#allocation7 + $0x70] sm:$0xff] }
 0x14e   : > { %1551 = vmatpush1.msra.mxu0 %v1456_v57  ;;  %1584 = vmatprep.mubr.f32.mxu0 %v3575_v0  ;;  %v1159_v57 = vld [vmem:[#allocation7 + $0x48] sm:$0xff] }
 0x14f   : > { %1640 = vmatpush1.msra.mxu1 %v1458_v4  ;;  %1673 = vmatprep.mubr.f32.mxu1 %v3575_v0  ;;  %v1161_v4 = vld [vmem:[#allocation7 + $0x58] sm:$0xff] }
 0x150   : > { %1585 = vmatmul.mubr.f32.vlgmr.msra.gmra.mxu0 %v3803_v28  ;;  %1674 = vmatmul.mubr.f32.vlgmr.msra.gmra.mxu1 %v3803_v28 }
 0x151   : > { %1762 = vmatprep.subr.mxu0 %v1211_v22  ;;  %1851 = vmatprep.subr.mxu1 %v1213_v23  ;;  %v1158_v22 = vld [vmem:[#allocation7 + $0x40] sm:$0xff]  ;;  %v1160_v23 = vld [vmem:[#allocation7 + $0x50] sm:$0xff] }
 0x152   : > { %1763 = vmatpush1.msra.mxu0 %v1210_v24  ;;  %1852 = vmatpush1.msra.mxu1 %v1212_v25  ;;  %v1155_v24 = vld [vmem:[#allocation7 + $0x28] sm:$0xff]  ;;  %v1157_v25 = vld [vmem:[#allocation7 + $0x38] sm:$0xff] }
 0x153   : > { %1764 = vmatprep.subr.mxu0 %v1207_v26  ;;  %1853 = vmatprep.subr.mxu1 %v1209_v27  ;;  %v1154_v26 = vld [vmem:[#allocation7 + $0x20] sm:$0xff]  ;;  %v1156_v27 = vld [vmem:[#allocation7 + $0x30] sm:$0xff] }
 0x154   : > { %1590 = vmatprep.mubr.f32.mxu0 %v3575_v0  ;;  %1679 = vmatprep.mubr.f32.mxu1 %v3575_v0 }
 0x155   : > { %1765 = vmatpush1.msra.mxu0 %v1206_v29  ;;  %1854 = vmatpush1.msra.mxu1 %v1208_v30  ;;  %v1151_v29 = vld [vmem:[#allocation7 + $0x8] sm:$0xff]  ;;  %v1153_v30 = vld [vmem:[#allocation7 + $0x18] sm:$0xff] }
 0x156   : > { %1591 = vmatmul.mubr.f32.gmra.mxu0 %v3818_v60  ;;  %1680 = vmatmul.mubr.f32.gmra.mxu1 %v3818_v60 }
 0x157   : > { %1766 = vmatprep.subr.mxu0 %v1203_v31  ;;  %1855 = vmatprep.subr.mxu1 %v1205_v32  ;;  %v1150_v31 = vld [vmem:[#allocation7] sm:$0xff]  ;;  %v1152_v32 = vld [vmem:[#allocation7 + $0x10] sm:$0xff] }
 0x158   : > { %1767 = vmatpush1.msra.mxu0 %v1202_v33  ;;  %1856 = vmatpush1.msra.mxu1 %v1204_v34  ;;  %v2290_v33 = vld [vmem:[#allocation10 + $0x5f8] sm:$0xff] }
 0x159   : > { %1768 = vmatprep.subr.mxu0 %v1199_v35  ;;  %1857 = vmatprep.subr.mxu1 %v1201_v36  ;;  %v2274_v34 = vld [vmem:[#allocation10 + $0x578] sm:$0xff]  ;;  %v2257_v35 = vld [vmem:[#allocation10 + $0x4f0] sm:$0xff] }
 0x15a   : > { %1596 = vmatprep.mubr.f32.mxu0 %v3575_v0  ;;  %1685 = vmatprep.mubr.f32.mxu1 %v3575_v0  ;;  %v2289_v36 = vld [vmem:[#allocation10 + $0x5f0] sm:$0xff] }
 0x15b   : > { %1769 = vmatpush1.msra.mxu0 %v1198_v37  ;;  %1858 = vmatpush1.msra.mxu1 %v1200_v43  ;;  %v2273_v37 = vld [vmem:[#allocation10 + $0x570] sm:$0xff]  ;;  %v2288_v43 = vld [vmem:[#allocation10 + $0x5e8] sm:$0xff] }
 0x15c   : > { %1597 = vmatmul.mubr.f32.gmra.mxu0 %v3833_v46  ;;  %1686 = vmatmul.mubr.f32.gmra.mxu1 %v3833_v46 }
 0x15d   : > { %1770 = vmatprep.subr.mxu0 %v1195_v44  ;;  %1859 = vmatprep.subr.mxu1 %v1197_v47  ;;  %v2272_v44 = vld [vmem:[#allocation10 + $0x568] sm:$0xff]  ;;  %v2255_v47 = vld [vmem:[#allocation10 + $0x4e0] sm:$0xff] }
 0x15e   : > { %1771 = vmatpush1.msra.mxu0 %v1194_v48  ;;  %1860 = vmatpush1.msra.mxu1 %v1196_v49  ;;  %v2287_v48 = vld [vmem:[#allocation10 + $0x5e0] sm:$0xff] }
 0x15f   : > { %1772 = vmatprep.subr.mxu0 %v1191_v50  ;;  %1861 = vmatprep.subr.mxu1 %v1193_v53  ;;  %v2239_v49 = vld [vmem:[#allocation10 + $0x460] sm:$0xff]  ;;  %v2254_v53 = vld [vmem:[#allocation10 + $0x4d8] sm:$0xff] }
 0x160   : > { %1602 = vmatprep.mubr.f32.mxu0 %v3575_v0  ;;  %1691 = vmatprep.mubr.f32.mxu1 %v3575_v0  ;;  %v2271_v50 = vld [vmem:[#allocation10 + $0x560] sm:$0xff] }
 0x161   : > { %1773 = vmatpush1.msra.mxu0 %v1190_v54  ;;  %1862 = vmatpush1.msra.mxu1 %v1192_v55  ;;  %v2286_v54 = vld [vmem:[#allocation10 + $0x5d8] sm:$0xff] }
 0x162   : > { %1603 = vmatmul.mubr.f32.gmra.mxu0 %v3842_v62  ;;  %1692 = vmatmul.mubr.f32.gmra.mxu1 %v3842_v62  ;;  %v2238_v55 = vld [vmem:[#allocation10 + $0x458] sm:$0xff] }
 0x163   : > { %1774 = vmatprep.subr.mxu0 %v1187_v56  ;;  %1863 = vmatprep.subr.mxu1 %v1189_v58  ;;  %v2270_v56 = vld [vmem:[#allocation10 + $0x558] sm:$0xff]  ;;  %v2253_v58 = vld [vmem:[#allocation10 + $0x4d0] sm:$0xff] }
 0x164   : > { %1775 = vmatpush1.msra.mxu0 %v1186_v59  ;;  %1864 = vmatpush1.msra.mxu1 %v1188_v61  ;;  %v2285_v59 = vld [vmem:[#allocation10 + $0x5d0] sm:$0xff] }
 0x165   : > { %1776 = vmatprep.subr.mxu0 %v1183_v63  ;;  %1865 = vmatprep.subr.mxu1 %v1185_v1  ;;  %v2237_v61 = vld [vmem:[#allocation10 + $0x450] sm:$0xff]  ;;  %v2252_v1 = vld [vmem:[#allocation10 + $0x4c8] sm:$0xff] }
 0x166   : > { %1777 = vmatpush1.msra.mxu0 %v1182_v2  ;;  %1866 = vmatpush1.msra.mxu1 %v1184_v45  ;;  %v2269_v63 = vld [vmem:[#allocation10 + $0x550] sm:$0xff]  ;;  %v2284_v2 = vld [vmem:[#allocation10 + $0x5c8] sm:$0xff] }
 0x167   : > { %1778 = vmatprep.subr.mxu0 %v1179_v3  ;;  %1867 = vmatprep.subr.mxu1 %v1181_v51  ;;  %v2236_v45 = vld [vmem:[#allocation10 + $0x448] sm:$0xff]  ;;  %v2251_v51 = vld [vmem:[#allocation10 + $0x4c0] sm:$0xff] }
 0x168   : > { %1779 = vmatpush1.msra.mxu0 %v1178_v5  ;;  %1868 = vmatpush1.msra.mxu1 %v1180_v6  ;;  %v2268_v3 = vld [vmem:[#allocation10 + $0x548] sm:$0xff]  ;;  %v2283_v5 = vld [vmem:[#allocation10 + $0x5c0] sm:$0xff] }
 0x169   : > { %1780 = vmatprep.subr.mxu0 %v1175_v7  ;;  %1869 = vmatprep.subr.mxu1 %v1177_v8  ;;  %v2235_v6 = vld [vmem:[#allocation10 + $0x440] sm:$0xff]  ;;  %v2250_v8 = vld [vmem:[#allocation10 + $0x4b8] sm:$0xff] }
 0x16a   : > { %1781 = vmatpush1.msra.mxu0 %v1174_v9  ;;  %1870 = vmatpush1.msra.mxu1 %v1176_v10  ;;  %v2267_v7 = vld [vmem:[#allocation10 + $0x540] sm:$0xff]  ;;  %v2282_v9 = vld [vmem:[#allocation10 + $0x5b8] sm:$0xff] }
 0x16b   : > { %1782 = vmatprep.subr.mxu0 %v1171_v52  ;;  %1871 = vmatprep.subr.mxu1 %v1173_v11  ;;  %v2234_v10 = vld [vmem:[#allocation10 + $0x438] sm:$0xff]  ;;  %v2249_v11 = vld [vmem:[#allocation10 + $0x4b0] sm:$0xff] }
 0x16c   : > { %1783 = vmatpush1.msra.mxu0 %v1170_v12  ;;  %1872 = vmatpush1.msra.mxu1 %v1172_v13  ;;  %v2266_v52 = vld [vmem:[#allocation10 + $0x538] sm:$0xff]  ;;  %v2281_v12 = vld [vmem:[#allocation10 + $0x5b0] sm:$0xff] }
 0x16d   : > { %1784 = vmatprep.subr.mxu0 %v1167_v14  ;;  %1873 = vmatprep.subr.mxu1 %v1169_v15  ;;  %v2233_v13 = vld [vmem:[#allocation10 + $0x430] sm:$0xff]  ;;  %v2248_v15 = vld [vmem:[#allocation10 + $0x4a8] sm:$0xff] }
 0x16e   : > { %1785 = vmatpush1.msra.mxu0 %v1166_v16  ;;  %1874 = vmatpush1.msra.mxu1 %v1168_v17  ;;  %v2265_v14 = vld [vmem:[#allocation10 + $0x530] sm:$0xff]  ;;  %v2280_v16 = vld [vmem:[#allocation10 + $0x5a8] sm:$0xff] }
 0x16f   : > { %1786 = vmatprep.subr.mxu0 %v1163_v18  ;;  %1875 = vmatprep.subr.mxu1 %v1165_v19  ;;  %v2232_v17 = vld [vmem:[#allocation10 + $0x428] sm:$0xff]  ;;  %v2247_v19 = vld [vmem:[#allocation10 + $0x4a0] sm:$0xff] }
 0x170   : > { %1787 = vmatpush1.msra.mxu0 %v1162_v20  ;;  %1876 = vmatpush1.msra.mxu1 %v1164_v21  ;;  %v2264_v18 = vld [vmem:[#allocation10 + $0x528] sm:$0xff]  ;;  %v2279_v20 = vld [vmem:[#allocation10 + $0x5a0] sm:$0xff] }
 0x171   : > { %1788 = vmatprep.subr.mxu0 %v1159_v57  ;;  %1877 = vmatprep.subr.mxu1 %v1161_v4  ;;  %v2231_v21 = vld [vmem:[#allocation10 + $0x420] sm:$0xff]  ;;  %v2246_v4 = vld [vmem:[#allocation10 + $0x498] sm:$0xff] }
 0x172   : > { %1789 = vmatpush1.msra.mxu0 %v1158_v22  ;;  %1878 = vmatpush1.msra.mxu1 %v1160_v23  ;;  %v2263_v57 = vld [vmem:[#allocation10 + $0x520] sm:$0xff]  ;;  %v2278_v22 = vld [vmem:[#allocation10 + $0x598] sm:$0xff] }
 0x173   : > { %1790 = vmatprep.subr.mxu0 %v1155_v24  ;;  %1879 = vmatprep.subr.mxu1 %v1157_v25  ;;  %v2230_v23 = vld [vmem:[#allocation10 + $0x418] sm:$0xff]  ;;  %v2245_v25 = vld [vmem:[#allocation10 + $0x490] sm:$0xff] }
 0x174   : > { %1791 = vmatpush1.msra.mxu0 %v1154_v26  ;;  %1880 = vmatpush1.msra.mxu1 %v1156_v27  ;;  %v2262_v24 = vld [vmem:[#allocation10 + $0x518] sm:$0xff]  ;;  %v2277_v26 = vld [vmem:[#allocation10 + $0x590] sm:$0xff] }
 0x175   : > { %1792 = vmatprep.subr.mxu0 %v1151_v29  ;;  %1881 = vmatprep.subr.mxu1 %v1153_v30  ;;  %v2229_v27 = vld [vmem:[#allocation10 + $0x410] sm:$0xff]  ;;  %v2244_v30 = vld [vmem:[#allocation10 + $0x488] sm:$0xff] }
 0x176   : > { %1793 = vmatpush1.msra.mxu0 %v1150_v31  ;;  %1826 = vmatprep.mubr.f32.mxu0 %v3575_v0  ;;  %v2261_v29 = vld [vmem:[#allocation10 + $0x510] sm:$0xff]  ;;  %v2276_v31 = vld [vmem:[#allocation10 + $0x588] sm:$0xff] }
 0x177   : > { %1882 = vmatpush1.msra.mxu1 %v1152_v32  ;;  %1915 = vmatprep.mubr.f32.mxu1 %v3575_v0  ;;  %v2228_v32 = vld [vmem:[#allocation10 + $0x408] sm:$0xff] }
 0x178   : > { %1827 = vmatmul.mubr.f32.vlgmr.msra.gmra.mxu0 %v3803_v28  ;;  %1916 = vmatmul.mubr.f32.vlgmr.msra.gmra.mxu1 %v3803_v28  ;;  %v2258_v28 = vld [vmem:[#allocation10 + $0x4f8] sm:$0xff] }
 0x179   : > { %1832 = vmatprep.mubr.f32.mxu0 %v3575_v0  ;;  %1921 = vmatprep.mubr.f32.mxu1 %v3575_v0 }
 0x17a   : > { %3054 = vmatprep.subr.mxu0 %v2258_v28  ;;  %3098 = vmatprep.subr.mxu1 %v2290_v33  ;;  %v2260_v28 = vld [vmem:[#allocation10 + $0x508] sm:$0xff]  ;;  %v2243_v33 = vld [vmem:[#allocation10 + $0x480] sm:$0xff] }
 0x17b   : > { %3099 = vmatpush3.msra.mxu1 %v2274_v34  ;;  %v2227_v34 = vld [vmem:[#allocation10 + $0x400] sm:$0xff] }
 0x17c   : > { %1833 = vmatmul.mubr.f32.gmra.mxu0 %v3818_v60  ;;  %1922 = vmatmul.mubr.f32.gmra.mxu1 %v3818_v60  ;;  %v2242_v60 = vld [vmem:[#allocation10 + $0x478] sm:$0xff] }
 0x17d   : > { %1838 = vmatprep.mubr.f32.mxu0 %v3575_v0  ;;  %1927 = vmatprep.mubr.f32.mxu1 %v3575_v0 }
 0x17e   : > { %3055 = vmatpush3.msra.mxu0 %v2242_v60  ;;  %3100 = vmatprep.subr.mxu1 %v2289_v36  ;;  %v2275_v60 = vld [vmem:[#allocation10 + $0x580] sm:$0xff]  ;;  %v2194_v36 = vld [vmem:[#allocation10 + $0x2f8] sm:$0xff] }
 0x17f   : > { %3056 = vmatprep.subr.mxu0 %v2257_v35  ;;  %3101 = vmatpush3.msra.mxu1 %v2273_v37  ;;  %v2259_v35 = vld [vmem:[#allocation10 + $0x500] sm:$0xff] }
 0x180   : > { %1839 = vmatmul.mubr.f32.gmra.mxu0 %v3833_v46  ;;  %1928 = vmatmul.mubr.f32.gmra.mxu1 %v3833_v46  ;;  %v2241_v46 = vld [vmem:[#allocation10 + $0x470] sm:$0xff] }
 0x181   : > { %1844 = vmatprep.mubr.f32.mxu0 %v3575_v0  ;;  %1933 = vmatprep.mubr.f32.mxu1 %v3575_v0  ;;  %v2256_v0 = vld [vmem:[#allocation10 + $0x4e8] sm:$0xff] }
 0x182   : > { %3057 = vmatpush3.msra.mxu0 %v2241_v46  ;;  %3102 = vmatprep.subr.mxu1 %v2288_v43  ;;  %v2226_v46 = vld [vmem:[#allocation10 + $0x3f8] sm:$0xff] }
 0x183   : > { %3058 = vmatprep.subr.mxu0 %v2256_v0  ;;  %3103 = vmatpush3.msra.mxu1 %v2272_v44 }
 0x184   : > { %1845 = vmatmul.mubr.f32.gmra.mxu0 %v3842_v62  ;;  %1934 = vmatmul.mubr.f32.gmra.mxu1 %v3842_v62  ;;  %v2240_v62 = vld [vmem:[#allocation10 + $0x468] sm:$0xff] }
 0x185   : > { %3059 = vmatpush3.msra.mxu0 %v2240_v62  ;;  %3104 = vmatprep.subr.mxu1 %v2287_v48 }
 0x186   : > { %3060 = vmatprep.subr.mxu0 %v2255_v47  ;;  %3105 = vmatpush3.msra.mxu1 %v2271_v50 }
 0x187   : > { %3061 = vmatpush3.msra.mxu0 %v2239_v49  ;;  %3106 = vmatprep.subr.mxu1 %v2286_v54 }
 0x188   : > { %3062 = vmatprep.subr.mxu0 %v2254_v53  ;;  %3107 = vmatpush3.msra.mxu1 %v2270_v56 }
 0x189   : > { %3063 = vmatpush3.msra.mxu0 %v2238_v55  ;;  %3108 = vmatprep.subr.mxu1 %v2285_v59 }
 0x18a   : > { %3064 = vmatprep.subr.mxu0 %v2253_v58  ;;  %3109 = vmatpush3.msra.mxu1 %v2269_v63 }
 0x18b   : > { %3065 = vmatpush3.msra.mxu0 %v2237_v61  ;;  %3110 = vmatprep.subr.mxu1 %v2284_v2 }
 0x18c   : > { %3066 = vmatprep.subr.mxu0 %v2252_v1  ;;  %3111 = vmatpush3.msra.mxu1 %v2268_v3 }
 0x18d   : > { %3067 = vmatpush3.msra.mxu0 %v2236_v45  ;;  %3112 = vmatprep.subr.mxu1 %v2283_v5 }
 0x18e   : > { %3068 = vmatprep.subr.mxu0 %v2251_v51  ;;  %3113 = vmatpush3.msra.mxu1 %v2267_v7 }
 0x18f   : > { %3069 = vmatpush3.msra.mxu0 %v2235_v6  ;;  %3114 = vmatprep.subr.mxu1 %v2282_v9  ;;  %v2020_v9 = vld [vmem:[#allocation8] sm:$0xf] }
 0x190   : > { %3070 = vmatprep.subr.mxu0 %v2250_v8  ;;  %3115 = vmatpush3.msra.mxu1 %v2266_v52  ;;  %v3906_v52 = vrot.slane %v2020_v9, %v3765_v39  ;;  %v3913_v39 = vrot.slane %v2020_v9, %v3771_v41 }
 0x191   : > { %3071 = vmatpush3.msra.mxu0 %v2234_v10  ;;  %3116 = vmatprep.subr.mxu1 %v2281_v12  ;;  %v3903_v10 = vrot.slane %v2020_v9, %v3768_v40 }
 0x192   : > { %3072 = vmatprep.subr.mxu0 %v2249_v11  ;;  %3117 = vmatpush3.msra.mxu1 %v2265_v14 }
 0x193   : > { %3073 = vmatpush3.msra.mxu0 %v2233_v13  ;;  %3118 = vmatprep.subr.mxu1 %v2280_v16 }
 0x194   : > { %3074 = vmatprep.subr.mxu0 %v2248_v15  ;;  %3119 = vmatpush3.msra.mxu1 %v2264_v18 }
 0x195   : > { %3075 = vmatpush3.msra.mxu0 %v2232_v17  ;;  %3120 = vmatprep.subr.mxu1 %v2279_v20 }
 0x196   : > { %3076 = vmatprep.subr.mxu0 %v2247_v19  ;;  %3121 = vmatpush3.msra.mxu1 %v2263_v57 }
 0x197   : > { %3077 = vmatpush3.msra.mxu0 %v2231_v21  ;;  %3122 = vmatprep.subr.mxu1 %v2278_v22 }
 0x198   : > { %3078 = vmatprep.subr.mxu0 %v2246_v4  ;;  %3123 = vmatpush3.msra.mxu1 %v2262_v24 }
 0x199   : > { %3079 = vmatpush3.msra.mxu0 %v2230_v23  ;;  %3124 = vmatprep.subr.mxu1 %v2277_v26  ;;  %v3916_v23 = vrot.slane %v2020_v9, %v3774_v42 }
 0x19a   : > { %3080 = vmatprep.subr.mxu0 %v2245_v25  ;;  %3125 = vmatpush3.msra.mxu1 %v2261_v29 }
 0x19b   : > { %3081 = vmatpush3.msra.mxu0 %v2229_v27  ;;  %3126 = vmatprep.subr.mxu1 %v2276_v31 }
 0x19c   : > { %3082 = vmatprep.subr.mxu0 %v2244_v30  ;;  %3127 = vmatpush3.msra.mxu1 %v2260_v28 }
 0x19d   : > { %3083 = vmatpush3.msra.mxu0 %v2228_v32  ;;  %3128 = vmatprep.subr.mxu1 %v2275_v60 }
 0x19e   : > { %3084 = vmatprep.subr.mxu0 %v2243_v33  ;;  %3129 = vmatpush3.msra.mxu1 %v2259_v35 }
 0x19f   : > { %3085 = vmatpush3.msra.mxu0 %v2227_v34  ;;  %3186 = vmatprep.subr.mxu1 %v2226_v46 }
 0x1a0   : > { %3142 = vmatprep.subr.mxu0 %v2194_v36 }
 0x1e9   : > { %v1344_v37 = vpop.f32.mrf.mxu0  ;;  %v1433_v0 = vpop.f32.mrf.mxu1 }
 0x1ea   : > { %v1714_v11 = vrot.slane %v1344_v37, 2  ;;  %v1720_v14 = vrot.slane %v1433_v0, 2 }
 0x1eb   : > { %v1346_v43 = vpop.f32.mrf.mxu0  ;;  %v1435_v62 = vpop.f32.mrf.mxu1 }
 0x1ec   : > { %v1717_v57 = vrot.slane %v1346_v43, 2  ;;  %v1723_v24 = vrot.slane %v1435_v62, 2 }
 0x1ef   : > { %v1350_v44 = vpop.f32.mrf.mxu0  ;;  %v1439_v47 = vpop.f32.mrf.mxu1 }
 0x1f0   : > { %v1715_v15 = vrot.slane %v1350_v44, 2  ;;  %v1721_v16 = vrot.slane %v1439_v47, 2 }
 0x1f1   : > { %v1352_v48 = vpop.f32.mrf.mxu0  ;;  %v1441_v49 = vpop.f32.mrf.mxu1 }
 0x1f2   : > { %v1718_v17 = vrot.slane %v1352_v48, 2  ;;  %v1724_v18 = vrot.slane %v1441_v49, 2  ;;  %v1716_v30 = vsel %vm1139_vm3, %v1714_v11, %v1715_v15  ;;  %v1722_v31 = vsel %vm1139_vm3, %v1720_v14, %v1721_v16 }
 0x1f4   : > { %v1719_v32 = vsel %vm1139_vm3, %v1717_v57, %v1718_v17  ;;  %v1725_v41 = vsel %vm1139_vm3, %v1723_v24, %v1724_v18 }
 0x1fb   : > { %v1356_v50 = vpop.f32.mrf.mxu0  ;;  %v1445_v53 = vpop.f32.mrf.mxu1 }
 0x1fc   : > { %v1726_v19 = vrot.slane %v1356_v50, 2  ;;  %v1730_v20 = vrot.slane %v1445_v53, 2 }
 0x1fd   : > { %v1358_v54 = vpop.f32.mrf.mxu0  ;;  %v1447_v55 = vpop.f32.mrf.mxu1 }
 0x1fe   : > { %v1728_v21 = vrot.slane %v1358_v54, 2  ;;  %v1732_v4 = vrot.slane %v1447_v55, 2  ;;  %v1727_v28 = vsel %vm1139_vm3, %v1715_v15, %v1726_v19  ;;  %v1731_v42 = vsel %vm1139_vm3, %v1721_v16, %v1730_v20 }
 0x200   : > { %v1729_v33 = vsel %vm1139_vm3, %v1718_v17, %v1728_v21  ;;  %v1733_v60 = vsel %vm1139_vm3, %v1724_v18, %v1732_v4 }
 0x201   : > { %v1362_v56 = vpop.f32.mrf.mxu0  ;;  %v1451_v58 = vpop.f32.mrf.mxu1 }
 0x202   : > { %v1734_v40 = vrot.slane %v1362_v56, 2  ;;  %v1738_v22 = vrot.slane %v1451_v58, 2 }
 0x203   : > { %v1364_v59 = vpop.f32.mrf.mxu0  ;;  %v3880_v61 = vpop.f32.mrf.mxu1 }
 0x204   : > { %v1736_v25 = vrot.slane %v1364_v59, 2  ;;  %v1740_v29 = vrot.slane %v3880_v61, 2  ;;  %v3932_v34 = vsel %vm1139_vm3, %v1726_v19, %v1734_v40  ;;  %v3935_v35 = vsel %vm1139_vm3, %v1730_v20, %v1738_v22 }
 0x205   : > { %v3938_v36 = vsel %vm1139_vm3, %v1734_v40, 0.0  ;;  %v3950_v44 = vsel %vm1139_vm3, %v1738_v22, 0.0 }
 0x206   : > { %v3947_v62 = vsel %vm1139_vm3, %v1728_v21, %v1736_v25  ;;  %v1741_v49 = vsel %vm1139_vm3, %v1732_v4, %v1740_v29  ;;  %v3958_v50 = vsel %vm1139_vm3, %v1736_v25, 0.0 }
 0x210   : > { %v3882_v63 = vpop.f32.mrf.mxu0  ;;  %v3884_v1 = vpop.f32.mrf.mxu1 }
 0x211   : > { %v1956_v47 = vrot.slane %v3882_v63, 4  ;;  %v1962_v53 = vrot.slane %v3884_v1, 4 }
 0x212   : > { %v3886_v2 = vpop.f32.mrf.mxu0  ;;  %v3888_v45 = vpop.f32.mrf.mxu1 }
 0x213   : > { %v1959_v63 = vrot.slane %v3886_v2, 4  ;;  %v1965_v9 = vrot.slane %v3888_v45, 4 }
 0x216   : > { %v3890_v3 = vpop.f32.mrf.mxu0  ;;  %v3892_v51 = vpop.f32.mrf.mxu1 }
 0x217   : > { %v1957_v46 = vrot.slane %v3890_v3, 4  ;;  %v1963_v37 = vrot.slane %v3892_v51, 4 }
 0x218   : > { %v3894_v5 = vpop.f32.mrf.mxu0  ;;  %v3896_v6 = vpop.f32.mrf.mxu1 }
 0x219   : > { %v1960_v48 = vrot.slane %v3894_v5, 4  ;;  %v1966_v54 = vrot.slane %v3896_v6, 4  ;;  %v1958_v1 = vsel %vm1137_vm2, %v1956_v47, %v1957_v46  ;;  %v1964_v6 = vsel %vm1137_vm2, %v1962_v53, %v1963_v37 }
 0x21b   : > { %v1961_v18 = vsel %vm1137_vm2, %v1959_v63, %v1960_v48 }
 0x21c   : > { %v3898_v7 = vpop.f32.mrf.mxu0  ;;  %v3900_v8 = vpop.f32.mrf.mxu1 }
 0x21d   : > { %v1968_v55 = vrot.slane %v3898_v7, 4  ;;  %v1972_v56 = vrot.slane %v3900_v8, 4 }
 0x21e   : > { %v3908_v12 = vpop.f32.mrf.mxu0  ;;  %v3910_v13 = vpop.f32.mrf.mxu1 }
 0x21f   : > { %v1970_v3 = vrot.slane %v3908_v12, 4  ;;  %v1974_v11 = vrot.slane %v3910_v13, 4  ;;  %v1967_v12 = vsel %vm1137_vm2, %v1965_v9, %v1966_v54  ;;  %v1969_v45 = vsel %vm1137_vm2, %v1957_v46, %v1968_v55 }
 0x220   : > { %v1973_v21 = vsel %vm1137_vm2, %v1963_v37, %v1972_v56 }
 0x221   : > { %v1971_v22 = vsel %vm1137_vm2, %v1960_v48, %v1970_v3 }
 0x222   : > { %v3918_v26 = vpop.f32.mrf.mxu0  ;;  %v3920_v27 = vpop.f32.mrf.mxu1 }
 0x223   : > { %v1976_v46 = vrot.slane %v3918_v26, 4  ;;  %v1980_v47 = vrot.slane %v3920_v27, 4  ;;  %v2190_v26 = vld [vmem:[#allocation10 + $0x2d8] sm:$0xff] }
 0x224   : > { %v3942_v0 = vpop.f32.mrf.mxu0  ;;  %v3944_v43 = vpop.f32.mrf.mxu1 }
 0x225   : > { %v1978_v57 = vrot.slane %v3942_v0, 4  ;;  %v2176_v0 = vld [vmem:[#allocation10 + $0x268] sm:$0xff] }
 0x238   : > { %v1828_v58 = vpop.f32.mrf.mxu0  ;;  %v1917_v59 = vpop.f32.mrf.mxu1 }
 0x239   : > { %v1829_v51 = vadd.f32 %v1828_v58, %v1716_v30  ;;  %v1918_v5 = vadd.f32 %v1917_v59, %v1722_v31  ;;  %v1982_v58 = vrot.slane %v3944_v43, 4 }
 0x23a   : > { %v1830_v14 = vpop.f32.mrf.mxu0  ;;  %v1919_v15 = vpop.f32.mrf.mxu1 }
 0x23b   : > { %v2004_v16 = vadd.f32 %v1958_v1, %v1829_v51  ;;  %v1831_v17 = vadd.f32 %v1830_v14, %v1719_v32  ;;  %v1920_v19 = vadd.f32 %v1919_v15, %v1725_v41  ;;  %v2006_v2 = vadd.f32 %v1964_v6, %v1918_v5 }
 0x23c   : > { %v1834_v20 = vpop.f32.mrf.mxu0  ;;  %v1923_v13 = vpop.f32.mrf.mxu1  ;;  %v1975_v41 = vsel %vm1137_vm2, %v1966_v54, %v1974_v11  ;;  %v1979_v54 = vsel %vm1137_vm2, %v1970_v3, %v1978_v57  ;;  %v1983_v3 = vsel %vm1137_vm2, %v1974_v11, %v1982_v58 }
 0x23d   : > { %v2005_v4 = vadd.f32 %v1961_v18, %v1831_v17  ;;  %v2007_v40 = vadd.f32 %v1967_v12, %v1920_v19  ;;  %v2042_v24 = vadd.f32 %v3903_v10, %v2004_v16  ;;  %v1835_v25 = vadd.f32 %v1834_v20, %v1727_v28  ;;  %v2178_v19 = vld [vmem:[#allocation10 + $0x278] sm:$0xff] }
 0x23e   : > { %v1924_v30 = vadd.f32 %v1923_v13, %v1731_v42  ;;  %v1836_v31 = vpop.f32.mrf.mxu0  ;;  %v1925_v32 = vpop.f32.mrf.mxu1  ;;  %v2044_v59 = vadd.f32 %v3906_v52, %v2006_v2  ;;  %v2193_v13 = vld [vmem:[#allocation10 + $0x2f0] sm:$0xff] }
 0x23f   : > { %v1837_v53 = vadd.f32 %v1836_v31, %v1729_v33  ;;  %v1926_v37 = vadd.f32 %v1925_v32, %v1733_v60  ;;  %v2043_v51 = vadd.f32 %v3913_v39, %v2005_v4  ;;  %v2045_v28 = vadd.f32 %v3916_v23, %v2007_v40  ;;  %v2177_v4 = vld [vmem:[#allocation10 + $0x270] sm:$0xff] }
 0x240   : > { %v1840_v63 = vpop.f32.mrf.mxu0  ;;  %v1929_v48 = vpop.f32.mrf.mxu1  ;;  %v2008_v42 = vadd.f32 %v1969_v45, %v1835_v25  ;;  %v3991_v1 = vmax.f32 %v2042_v24, 0.0  ;;  %v2010_v33 = vadd.f32 %v1973_v21, %v1924_v30  ;;  %v4000_v2 = vmax.f32 %v2044_v59, 0.0  ;;  %v2210_v45 = vld [vmem:[#allocation10 + $0x378] sm:$0xff]  ;;  %v2225_v21 = vld [vmem:[#allocation10 + $0x3f0] sm:$0xff] }
 0x241   : > { %v2009_v5 = vadd.f32 %v1971_v22, %v1837_v53  ;;  %v2011_v9 = vadd.f32 %v1975_v41, %v1926_v37  ;;  %v3993_v6 = vmax.f32 %v2043_v51, 0.0  ;;  %v3995_v14 = vmax.f32 %v2045_v28, 0.0  ;;  %v2192_v53 = vld [vmem:[#allocation10 + $0x2e8] sm:$0xff] }
 0x242   : > { %v1842_v60 = vpop.f32.mrf.mxu0  ;;  %v1931_v43 = vpop.f32.mrf.mxu1  ;;  %v1841_v15 = vadd.f32 %v1840_v63, %v3932_v34  ;;  %v1930_v16 = vadd.f32 %v1929_v48, %v3935_v35  ;;  %v2046_v40 = vadd.f32 %v3903_v10, %v2008_v42  ;;  %v1981_v22 = vsel %vm1137_vm2, %v1972_v56, %v1980_v47  ;;  %v2224_v63 = vld [vmem:[#allocation10 + $0x3e8] sm:$0xff] }
 0x243   : > { %v1843_v17 = vadd.f32 %v1842_v60, %v3947_v62  ;;  %v1932_v18 = vadd.f32 %v1931_v43, %v1741_v49  ;;  %2355 = vmatprep.mubr.f32.mxu0 %v3993_v6  ;;  %2440 = vmatprep.mubr.f32.mxu1 %v3995_v14  ;;  %v2047_v34 = vadd.f32 %v3913_v39, %v2009_v5  ;;  %v1761_v56 = vsel %vm1139_vm3, %v1740_v29, 0.0  ;;  %v2207_v43 = vld [vmem:[#allocation10 + $0x360] sm:$0xff] }
 0x244   : > { %v1846_v12 = vpop.f32.mrf.mxu0  ;;  %v1935_v20 = vpop.f32.mrf.mxu1  ;;  %v2049_v35 = vadd.f32 %v3916_v23, %v2011_v9  ;;  %v1977_v62 = vsel %vm1137_vm2, %v1968_v55, %v1976_v46  ;;  %2356 = vmatmul.mubr.f32.vlgmr.msra.gmra.mxu0 %v3991_v1  ;;  %2441 = vmatmul.mubr.f32.vlgmr.msra.gmra.mxu1 %v4000_v2  ;;  %v2209_v55 = vld [vmem:[#allocation10 + $0x370] sm:$0xff]  ;;  %v2048_v31 = vadd.f32 %v3906_v52, %v2010_v33  ;;  %v2001_v37 = vsel %vm1137_vm2, %v1978_v57, 0.0  ;;  %v2208_v9 = vld [vmem:[#allocation10 + $0x368] sm:$0xff] }
 0x245   : > { %v2013_v49 = vadd.f32 %v1979_v54, %v1843_v17  ;;  %v2015_v11 = vadd.f32 %v1983_v3, %v1932_v18  ;;  %3143 = vmatpush3.msra.mxu0 %v2178_v19  ;;  %v4020_v25 = vmax.f32 %v2047_v34, 0.0  ;;  %v2012_v32 = vadd.f32 %v1977_v62, %v1841_v15  ;;  %3187 = vmatpush3.msra.mxu1 %v2210_v45  ;;  %v2191_v54 = vld [vmem:[#allocation10 + $0x2e0] sm:$0xff]  ;;  %v2206_v45 = vld [vmem:[#allocation10 + $0x358] sm:$0xff] }
 0x246   : > { %v1848_v7 = vpop.f32.mrf.mxu0  ;;  %v1937_v24 = vpop.f32.mrf.mxu1  ;;  %v4022_v30 = vmax.f32 %v2049_v35, 0.0  ;;  %v2014_v41 = vadd.f32 %v1981_v22, %v1930_v16  ;;  %3144 = vmatprep.subr.mxu0 %v2193_v13  ;;  %3188 = vmatprep.subr.mxu1 %v2225_v21  ;;  %v2003_v28 = vsel %vm1137_vm2, %v1982_v58, 0.0  ;;  %v4037_v29 = vmax.f32 %v2046_v40, 0.0  ;;  %v2175_v58 = vld [vmem:[#allocation10 + $0x260] sm:$0xff]  ;;  %v2189_v13 = vld [vmem:[#allocation10 + $0x2d0] sm:$0xff]  ;;  %v2220_v21 = vld [vmem:[#allocation10 + $0x3c8] sm:$0xff] }
 0x247   : > { %v1849_v8 = vadd.f32 %v1848_v7, %v3958_v50  ;;  %v1938_v59 = vadd.f32 %v1937_v24, %v1761_v56  ;;  %3145 = vmatpush3.msra.mxu0 %v2177_v4  ;;  %v2051_v48 = vadd.f32 %v3913_v39, %v2013_v49  ;;  %v2053_v51 = vadd.f32 %v3916_v23, %v2015_v11  ;;  %v2173_v35 = vld [vmem:[#allocation10 + $0x250] sm:$0xff]  ;;  %v2204_v22 = vld [vmem:[#allocation10 + $0x348] sm:$0xff]  ;;  %v2187_v7 = vld [vmem:[#allocation10 + $0x2c0] sm:$0xff] }
 0x248   : > { %v1847_v50 = vadd.f32 %v1846_v12, %v3938_v36  ;;  %3189 = vmatpush3.msra.mxu1 %v2209_v55  ;;  %2360 = vmatprep.mubr.f32.mxu0 %v4020_v25  ;;  %v1936_v57 = vadd.f32 %v1935_v20, %v3950_v44  ;;  %v4041_v5 = vmax.f32 %v2048_v31, 0.0  ;;  %v2223_v36 = vld [vmem:[#allocation10 + $0x3e0] sm:$0xff]  ;;  %v2050_v60 = vadd.f32 %v3903_v10, %v2012_v32  ;;  %v2222_v12 = vld [vmem:[#allocation10 + $0x3d8] sm:$0xff]  ;;  %v2205_v11 = vld [vmem:[#allocation10 + $0x350] sm:$0xff] }
 0x249   : > { %v2017_v61 = vadd.f32 %v2001_v37, %v1849_v8  ;;  %v2019_v42 = vadd.f32 %v2003_v28, %v1938_v59  ;;  %2445 = vmatprep.mubr.f32.mxu1 %v4022_v30  ;;  %3146 = vmatprep.subr.mxu0 %v2192_v53  ;;  %v4044_v33 = vmax.f32 %v2051_v48, 0.0  ;;  %v2000_v44 = vsel %vm1137_vm2, %v1976_v46, 0.0  ;;  %v2219_v24 = vld [vmem:[#allocation10 + $0x3c0] sm:$0xff]  ;;  %v2186_v32 = vld [vmem:[#allocation10 + $0x2b8] sm:$0xff]  ;;  %v2185_v53 = vld [vmem:[#allocation10 + $0x2b0] sm:$0xff] }
 0x24a   : > { %3190 = vmatprep.subr.mxu1 %v2224_v63  ;;  %2361 = vmatmul.mubr.f32.gmra.mxu0 %v4037_v29  ;;  %v4051_v15 = vmax.f32 %v2053_v51, 0.0  ;;  %v2052_v16 = vadd.f32 %v3906_v52, %v2014_v41  ;;  %v2002_v17 = vsel %vm1137_vm2, %v1980_v47, 0.0  ;;  %v2016_v18 = vadd.f32 %v2000_v44, %v1847_v50  ;;  %v2174_v47 = vld [vmem:[#allocation10 + $0x258] sm:$0xff]  ;;  %v2171_v55 = vld [vmem:[#allocation10 + $0x240] sm:$0xff]  ;;  %v2217_v37 = vld [vmem:[#allocation10 + $0x3b0] sm:$0xff] }
 0x24b   : > { %2446 = vmatmul.mubr.f32.gmra.mxu1 %v4041_v5  ;;  %3147 = vmatpush3.msra.mxu0 %v2176_v0  ;;  %v2055_v19 = vadd.f32 %v3913_v39, %v2017_v61  ;;  %v2018_v3 = vadd.f32 %v2002_v17, %v1936_v57  ;;  %v2057_v46 = vadd.f32 %v3916_v23, %v2019_v42  ;;  %v4060_v20 = vadd.s32 24, %v3762_v38  ;;  %v2221_v38 = vld [vmem:[#allocation10 + $0x3d0] sm:$0xff]  ;;  %v2203_v31 = vld [vmem:[#allocation10 + $0x340] sm:$0xff]  ;;  %v2218_v41 = vld [vmem:[#allocation10 + $0x3b8] sm:$0xff] }
 0x24c   : > { %3191 = vmatpush3.msra.mxu1 %v2208_v9  ;;  %3148 = vmatprep.subr.mxu0 %v2191_v54  ;;  %v4063_v27 = vmax.f32 %v2050_v60, 0.0  ;;  %v4066_v39 = vmax.f32 %v2052_v16, 0.0  ;;  %v2054_v23 = vadd.f32 %v3903_v10, %v2016_v18  ;;  %v2188_v10 = vld [vmem:[#allocation10 + $0x2c8] sm:$0xff]  ;;  %v2170_v8 = vld [vmem:[#allocation10 + $0x238] sm:$0xff]  ;;  %v2169_v59 = vld [vmem:[#allocation10 + $0x230] sm:$0xff] }
 0x24d   : > { %3192 = vmatprep.subr.mxu1 %v2223_v36  ;;  %3149 = vmatpush3.msra.mxu0 %v2175_v58  ;;  %v4069_v34 = vmax.f32 %v2055_v19, 0.0  ;;  %v2056_v62 = vadd.f32 %v3906_v52, %v2018_v3  ;;  %v4073_v49 = vmax.f32 %v2057_v46, 0.0  ;;  %vm2082_vm4 = vcmp.lt.s32.totalorder %v4060_v20, 28  ;;  %v2172_v52 = vld [vmem:[#allocation10 + $0x248] sm:$0xff]  ;;  %v2202_v56 = vld [vmem:[#allocation10 + $0x338] sm:$0xff]  ;;  %v2201_v63 = vld [vmem:[#allocation10 + $0x330] sm:$0xff] }
 0x24e   : > { %3193 = vmatpush3.msra.mxu1 %v2207_v43  ;;  %2365 = vmatprep.mubr.f32.mxu0 %v4044_v33  ;;  %v4077_v4 = vmax.f32 %v2054_v23, 0.0  ;;  %v2184_v48 = vld [vmem:[#allocation10 + $0x2a8] sm:$0xff]  ;;  %v2183_v61 = vld [vmem:[#allocation10 + $0x2a0] sm:$0xff]  ;;  %v2182_v9 = vld [vmem:[#allocation10 + $0x298] sm:$0xff] }
 0x24f   : > { %2450 = vmatprep.mubr.f32.mxu1 %v4051_v15  ;;  %3150 = vmatprep.subr.mxu0 %v2190_v26  ;;  %v4082_v40 = vmax.f32 %v2056_v62, 0.0  ;;  %v2216_v51 = vld [vmem:[#allocation10 + $0x3a8] sm:$0xff]  ;;  %v2215_v0 = vld [vmem:[#allocation10 + $0x3a0] sm:$0xff]  ;;  %v2214_v54 = vld [vmem:[#allocation10 + $0x398] sm:$0xff] }
 0x250   : > { %3194 = vmatprep.subr.mxu1 %v2222_v12  ;;  %2366 = vmatmul.mubr.f32.gmra.mxu0 %v4063_v27  ;;  %v2168_v28 = vld [vmem:[#allocation10 + $0x228] sm:$0xff]  ;;  %v2167_v57 = vld [vmem:[#allocation10 + $0x220] sm:$0xff]  ;;  %v2166_v36 = vld [vmem:[#allocation10 + $0x218] sm:$0xff] }
 0x251   : > { %2451 = vmatmul.mubr.f32.gmra.mxu1 %v4066_v39  ;;  %3151 = vmatpush3.msra.mxu0 %v2174_v47  ;;  %v2200_v50 = vld [vmem:[#allocation10 + $0x328] sm:$0xff]  ;;  %v2199_v42 = vld [vmem:[#allocation10 + $0x320] sm:$0xff]  ;;  %v2198_v58 = vld [vmem:[#allocation10 + $0x318] sm:$0xff] }
 0x252   : > { %3195 = vmatpush3.msra.mxu1 %v2206_v45  ;;  %3152 = vmatprep.subr.mxu0 %v2189_v13  ;;  %v2181_v60 = vld [vmem:[#allocation10 + $0x290] sm:$0xff]  ;;  %v2180_v17 = vld [vmem:[#allocation10 + $0x288] sm:$0xff]  ;;  %v2179_v3 = vld [vmem:[#allocation10 + $0x280] sm:$0xff] }
 0x253   : > { %3196 = vmatprep.subr.mxu1 %v2221_v38  ;;  %3153 = vmatpush3.msra.mxu0 %v2173_v35  ;;  %v2213_v44 = vld [vmem:[#allocation10 + $0x390] sm:$0xff]  ;;  %v2212_v18 = vld [vmem:[#allocation10 + $0x388] sm:$0xff]  ;;  %v2211_v46 = vld [vmem:[#allocation10 + $0x380] sm:$0xff] }
 0x254   : > { %3197 = vmatpush3.msra.mxu1 %v2205_v11  ;;  %3027 = vmatprep.mubr.msk.f32.mxu0 %vm2082_vm4, %v4069_v34  ;;  %v2165_v43 = vld [vmem:[#allocation10 + $0x210] sm:$0xff]  ;;  %v2164_v19 = vld [vmem:[#allocation10 + $0x208] sm:$0xff]  ;;  %v2163_v12 = vld [vmem:[#allocation10 + $0x200] sm:$0xff] }
 0x255   : > { %3029 = vmatprep.mubr.msk.f32.mxu1 %vm2082_vm4, %v4073_v49  ;;  %3154 = vmatprep.subr.mxu0 %v2188_v10  ;;  %v2197_v16 = vld [vmem:[#allocation10 + $0x310] sm:$0xff]  ;;  %v2196_v26 = vld [vmem:[#allocation10 + $0x308] sm:$0xff]  ;;  %v2195_v47 = vld [vmem:[#allocation10 + $0x300] sm:$0xff] }
 0x256   : > { %3198 = vmatprep.subr.mxu1 %v2220_v21  ;;  %3028 = vmatmul.mubr.msk.f32.gmra.mxu0 %vm2082_vm4, %v4077_v4  ;;  %v2130_v45 = vld [vmem:[#allocation10 + $0xf8] sm:$0xff]  ;;  %v2129_v35 = vld [vmem:[#allocation10 + $0xf0] sm:$0xff]  ;;  %v2128_v21 = vld [vmem:[#allocation10 + $0xe8] sm:$0xff] }
 0x257   : > { %3030 = vmatmul.mubr.msk.f32.gmra.mxu1 %vm2082_vm4, %v4082_v40  ;;  %3155 = vmatpush3.msra.mxu0 %v2172_v52  ;;  %v2162_v13 = vld [vmem:[#allocation10 + $0x1f8] sm:$0xff]  ;;  %v2161_v62 = vld [vmem:[#allocation10 + $0x1f0] sm:$0xff]  ;;  %v2160_v52 = vld [vmem:[#allocation10 + $0x1e8] sm:$0xff] }
 0x258   : > { %3199 = vmatpush3.msra.mxu1 %v2204_v22  ;;  %3156 = vmatprep.subr.mxu0 %v2187_v7  ;;  %v2114_v23 = vld [vmem:[#allocation10 + $0x78] sm:$0xff]  ;;  %v2113_v11 = vld [vmem:[#allocation10 + $0x70] sm:$0xff]  ;;  %v2112_v22 = vld [vmem:[#allocation10 + $0x68] sm:$0xff] }
 0x259   : > { %2527 = vmatprep.mubr.f32.mxu0 %v3993_v6  ;;  %3200 = vmatprep.subr.mxu1 %v2219_v24  ;;  %v2146_v38 = vld [vmem:[#allocation10 + $0x178] sm:$0xff]  ;;  %v2145_v10 = vld [vmem:[#allocation10 + $0x170] sm:$0xff]  ;;  %v2144_v7 = vld [vmem:[#allocation10 + $0x168] sm:$0xff] }
 0x25a   : > { %2612 = vmatprep.mubr.f32.mxu1 %v3995_v14  ;;  %3157 = vmatpush3.msra.mxu0 %v2171_v55  ;;  %v2127_v24 = vld [vmem:[#allocation10 + $0xe0] sm:$0xff] }
 0x25b   : > { %3201 = vmatpush3.msra.mxu1 %v2203_v31  ;;  %3158 = vmatprep.subr.mxu0 %v2186_v32  ;;  %v2159_v55 = vld [vmem:[#allocation10 + $0x1e0] sm:$0xff] }
 0x25c   : > { %3202 = vmatprep.subr.mxu1 %v2218_v41  ;;  %3159 = vmatpush3.msra.mxu0 %v2170_v8  ;;  %v2111_v31 = vld [vmem:[#allocation10 + $0x60] sm:$0xff]  ;;  %v2126_v41 = vld [vmem:[#allocation10 + $0xd8] sm:$0xff] }
 0x25d   : > { %3203 = vmatpush3.msra.mxu1 %v2202_v56  ;;  %3160 = vmatprep.subr.mxu0 %v2185_v53  ;;  %v2143_v32 = vld [vmem:[#allocation10 + $0x160] sm:$0xff]  ;;  %v2158_v8 = vld [vmem:[#allocation10 + $0x1d8] sm:$0xff] }
 0x25e   : > { %3204 = vmatprep.subr.mxu1 %v2217_v37  ;;  %3161 = vmatpush3.msra.mxu0 %v2169_v59  ;;  %v2110_v56 = vld [vmem:[#allocation10 + $0x58] sm:$0xff]  ;;  %v2125_v37 = vld [vmem:[#allocation10 + $0xd0] sm:$0xff] }
 0x25f   : > { %3205 = vmatpush3.msra.mxu1 %v2201_v63  ;;  %3162 = vmatprep.subr.mxu0 %v2184_v48  ;;  %v2142_v53 = vld [vmem:[#allocation10 + $0x158] sm:$0xff]  ;;  %v2157_v59 = vld [vmem:[#allocation10 + $0x1d0] sm:$0xff] }
 0x260   : > { %3206 = vmatprep.subr.mxu1 %v2216_v51  ;;  %3163 = vmatpush3.msra.mxu0 %v2168_v28  ;;  %v2109_v63 = vld [vmem:[#allocation10 + $0x50] sm:$0xff]  ;;  %v2124_v51 = vld [vmem:[#allocation10 + $0xc8] sm:$0xff] }
 0x261   : > { %3207 = vmatpush3.msra.mxu1 %v2200_v50  ;;  %3164 = vmatprep.subr.mxu0 %v2183_v61  ;;  %v2141_v48 = vld [vmem:[#allocation10 + $0x150] sm:$0xff]  ;;  %v2156_v28 = vld [vmem:[#allocation10 + $0x1c8] sm:$0xff] }
 0x262   : > { %3208 = vmatprep.subr.mxu1 %v2215_v0  ;;  %3165 = vmatpush3.msra.mxu0 %v2167_v57  ;;  %v2108_v50 = vld [vmem:[#allocation10 + $0x48] sm:$0xff]  ;;  %v2123_v0 = vld [vmem:[#allocation10 + $0xc0] sm:$0xff] }
 0x263   : > { %3209 = vmatpush3.msra.mxu1 %v2199_v42  ;;  %3166 = vmatprep.subr.mxu0 %v2182_v9  ;;  %v2140_v61 = vld [vmem:[#allocation10 + $0x148] sm:$0xff]  ;;  %v2155_v57 = vld [vmem:[#allocation10 + $0x1c0] sm:$0xff] }
 0x264   : > { %3210 = vmatprep.subr.mxu1 %v2214_v54  ;;  %3167 = vmatpush3.msra.mxu0 %v2166_v36  ;;  %v2107_v42 = vld [vmem:[#allocation10 + $0x40] sm:$0xff]  ;;  %v2122_v54 = vld [vmem:[#allocation10 + $0xb8] sm:$0xff] }
 0x265   : > { %3211 = vmatpush3.msra.mxu1 %v2198_v58  ;;  %3168 = vmatprep.subr.mxu0 %v2181_v60  ;;  %v2139_v9 = vld [vmem:[#allocation10 + $0x140] sm:$0xff]  ;;  %v2154_v36 = vld [vmem:[#allocation10 + $0x1b8] sm:$0xff] }
 0x266   : > { %3212 = vmatprep.subr.mxu1 %v2213_v44  ;;  %3169 = vmatpush3.msra.mxu0 %v2165_v43  ;;  %v2106_v58 = vld [vmem:[#allocation10 + $0x38] sm:$0xff]  ;;  %v2121_v44 = vld [vmem:[#allocation10 + $0xb0] sm:$0xff] }
 0x267   : > { %3213 = vmatpush3.msra.mxu1 %v2197_v16  ;;  %3170 = vmatprep.subr.mxu0 %v2180_v17  ;;  %v2138_v60 = vld [vmem:[#allocation10 + $0x138] sm:$0xff]  ;;  %v2153_v43 = vld [vmem:[#allocation10 + $0x1b0] sm:$0xff] }
 0x268   : > { %3214 = vmatprep.subr.mxu1 %v2212_v18  ;;  %3171 = vmatpush3.msra.mxu0 %v2164_v19  ;;  %v2105_v16 = vld [vmem:[#allocation10 + $0x30] sm:$0xff]  ;;  %v2152_v18 = vld [vmem:[#allocation10 + $0x1a8] sm:$0xff] }
 0x269   : > { %3215 = vmatpush3.msra.mxu1 %v2196_v26  ;;  %3172 = vmatprep.subr.mxu0 %v2179_v3  ;;  %v2137_v17 = vld [vmem:[#allocation10 + $0x130] sm:$0xff]  ;;  %v2104_v19 = vld [vmem:[#allocation10 + $0x28] sm:$0xff]  ;;  %v2119_v26 = vld [vmem:[#allocation10 + $0xa0] sm:$0xff] }
 0x26a   : > { %3216 = vmatprep.subr.mxu1 %v2211_v46  ;;  %3173 = vmatpush3.msra.mxu0 %v2163_v12  ;;  %v2151_v3 = vld [vmem:[#allocation10 + $0x1a0] sm:$0xff] }
 0x26b   : > { %3217 = vmatpush3.msra.mxu1 %v2195_v47  ;;  %2528 = vmatmul.mubr.f32.vlgmr.msra.gmra.mxu0 %v3991_v1  ;;  %v2103_v46 = vld [vmem:[#allocation10 + $0x20] sm:$0xff]  ;;  %v2118_v47 = vld [vmem:[#allocation10 + $0x98] sm:$0xff] }
 0x26c   : > { %2613 = vmatmul.mubr.f32.vlgmr.msra.gmra.mxu1 %v4000_v2  ;;  %3230 = vmatprep.subr.mxu0 %v2130_v45  ;;  %v2135_v12 = vld [vmem:[#allocation10 + $0x120] sm:$0xff]  ;;  %v2150_v45 = vld [vmem:[#allocation10 + $0x198] sm:$0xff] }
 0x26d   : > { %3274 = vmatprep.subr.mxu1 %v2162_v13  ;;  %2532 = vmatprep.mubr.f32.mxu0 %v4020_v25  ;;  %v2102_v13 = vld [vmem:[#allocation10 + $0x18] sm:$0xff] }
 0x26e   : > { %2617 = vmatprep.mubr.f32.mxu1 %v4022_v30  ;;  %3231 = vmatpush3.msra.mxu0 %v2114_v23  ;;  %v2134_v23 = vld [vmem:[#allocation10 + $0x118] sm:$0xff] }
 0x26f   : > { %3275 = vmatpush3.msra.mxu1 %v2146_v38  ;;  %3232 = vmatprep.subr.mxu0 %v2129_v35  ;;  %v2117_v38 = vld [vmem:[#allocation10 + $0x90] sm:$0xff] }
 0x270   : > { %3276 = vmatprep.subr.mxu1 %v2161_v62  ;;  %3233 = vmatpush3.msra.mxu0 %v2113_v11  ;;  %v2149_v35 = vld [vmem:[#allocation10 + $0x190] sm:$0xff] }
 0x271   : > { %3277 = vmatpush3.msra.mxu1 %v2145_v10  ;;  %2533 = vmatmul.mubr.f32.gmra.mxu0 %v4037_v29  ;;  %v2101_v62 = vld [vmem:[#allocation10 + $0x10] sm:$0xff]  ;;  %v2116_v10 = vld [vmem:[#allocation10 + $0x88] sm:$0xff] }
 0x272   : > { %2618 = vmatmul.mubr.f32.gmra.mxu1 %v4041_v5  ;;  %3234 = vmatprep.subr.mxu0 %v2128_v21  ;;  %v2133_v11 = vld [vmem:[#allocation10 + $0x110] sm:$0xff]  ;;  %v2148_v21 = vld [vmem:[#allocation10 + $0x188] sm:$0xff] }
 0x273   : > { %3278 = vmatprep.subr.mxu1 %v2160_v52  ;;  %2537 = vmatprep.mubr.f32.mxu0 %v4044_v33  ;;  %v2100_v52 = vld [vmem:[#allocation10 + $0x8] sm:$0xff] }
 0x274   : > { %2622 = vmatprep.mubr.f32.mxu1 %v4051_v15  ;;  %3235 = vmatpush3.msra.mxu0 %v2112_v22  ;;  %v2132_v22 = vld [vmem:[#allocation10 + $0x108] sm:$0xff] }
 0x275   : > { %3279 = vmatpush3.msra.mxu1 %v2144_v7  ;;  %3236 = vmatprep.subr.mxu0 %v2127_v24  ;;  %v2115_v7 = vld [vmem:[#allocation10 + $0x80] sm:$0xff] }
 0x276   : > { %3280 = vmatprep.subr.mxu1 %v2159_v55  ;;  %3237 = vmatpush3.msra.mxu0 %v2111_v31  ;;  %v2147_v24 = vld [vmem:[#allocation10 + $0x180] sm:$0xff] }
 0x277   : > { %3281 = vmatpush3.msra.mxu1 %v2143_v32  ;;  %2538 = vmatmul.mubr.f32.gmra.mxu0 %v4063_v27  ;;  %v2099_v55 = vld [vmem:[#allocation10] sm:$0xff] }
 0x278   : > { %2623 = vmatmul.mubr.f32.gmra.mxu1 %v4066_v39  ;;  %3238 = vmatprep.subr.mxu0 %v2126_v41  ;;  %v2131_v31 = vld [vmem:[#allocation10 + $0x100] sm:$0xff] }
 0x279   : > { %3282 = vmatprep.subr.mxu1 %v2158_v8  ;;  %3031 = vmatprep.mubr.msk.f32.mxu0 %vm2082_vm4, %v4069_v34 }
 0x27a   : > { %3033 = vmatprep.mubr.msk.f32.mxu1 %vm2082_vm4, %v4073_v49  ;;  %3239 = vmatpush3.msra.mxu0 %v2110_v56  ;;  %v4161_v56 = vstv %s2461_s19 }
 0x27b   : > { %3283 = vmatpush3.msra.mxu1 %v2142_v53  ;;  %3240 = vmatprep.subr.mxu0 %v2125_v37 }
 0x27c   : > { %3284 = vmatprep.subr.mxu1 %v2157_v59  ;;  %3241 = vmatpush3.msra.mxu0 %v2109_v63 }
 0x27d   : > { %3285 = vmatpush3.msra.mxu1 %v2141_v48  ;;  %3032 = vmatmul.mubr.msk.f32.gmra.mxu0 %vm2082_vm4, %v4077_v4 }
 0x27e   : > { %3034 = vmatmul.mubr.msk.f32.gmra.mxu1 %vm2082_vm4, %v4082_v40  ;;  %3242 = vmatprep.subr.mxu0 %v2124_v51 }
 0x27f   : > { %3286 = vmatprep.subr.mxu1 %v2156_v28  ;;  %3243 = vmatpush3.msra.mxu0 %v2108_v50 }
 0x280   : > { %2737 = vmatprep.mubr.f32.mxu0 %v3993_v6  ;;  %3287 = vmatpush3.msra.mxu1 %v2140_v61  ;;  %v2120_v6 = vld [vmem:[#allocation10 + $0xa8] sm:$0xff] }
 0x281   : > { %2822 = vmatprep.mubr.f32.mxu1 %v3995_v14  ;;  %3244 = vmatprep.subr.mxu0 %v2123_v0  ;;  %v2136_v14 = vld [vmem:[#allocation10 + $0x128] sm:$0xff] }
 0x282   : > { %3288 = vmatprep.subr.mxu1 %v2155_v57  ;;  %3245 = vmatpush3.msra.mxu0 %v2107_v42 }
 0x283   : > { %3289 = vmatpush3.msra.mxu1 %v2139_v9  ;;  %3246 = vmatprep.subr.mxu0 %v2122_v54 }
 0x284   : > { %3290 = vmatprep.subr.mxu1 %v2154_v36  ;;  %3247 = vmatpush3.msra.mxu0 %v2106_v58 }
 0x285   : > { %3291 = vmatpush3.msra.mxu1 %v2138_v60  ;;  %3248 = vmatprep.subr.mxu0 %v2121_v44 }
 0x286   : > { %3292 = vmatprep.subr.mxu1 %v2153_v43  ;;  %3249 = vmatpush3.msra.mxu0 %v2105_v16 }
 0x287   : > { %3293 = vmatpush3.msra.mxu1 %v2137_v17  ;;  %3250 = vmatprep.subr.mxu0 %v2120_v6 }
 0x288   : > { %3294 = vmatprep.subr.mxu1 %v2152_v18  ;;  %3251 = vmatpush3.msra.mxu0 %v2104_v19 }
 0x289   : > { %3295 = vmatpush3.msra.mxu1 %v2136_v14  ;;  %3252 = vmatprep.subr.mxu0 %v2119_v26 }
 0x28a   : > { %3296 = vmatprep.subr.mxu1 %v2151_v3  ;;  %3253 = vmatpush3.msra.mxu0 %v2103_v46 }
 0x28b   : > { %3297 = vmatpush3.msra.mxu1 %v2135_v12  ;;  %3254 = vmatprep.subr.mxu0 %v2118_v47 }
 0x28c   : > { %3298 = vmatprep.subr.mxu1 %v2150_v45  ;;  %3255 = vmatpush3.msra.mxu0 %v2102_v13 }
 0x28d   : > { %3299 = vmatpush3.msra.mxu1 %v2134_v23  ;;  %3256 = vmatprep.subr.mxu0 %v2117_v38 }
 0x28e   : > { %3300 = vmatprep.subr.mxu1 %v2149_v35  ;;  %3257 = vmatpush3.msra.mxu0 %v2101_v62 }
 0x28f   : > { %3301 = vmatpush3.msra.mxu1 %v2133_v11  ;;  %3258 = vmatprep.subr.mxu0 %v2116_v10 }
 0x290   : > { %3302 = vmatprep.subr.mxu1 %v2148_v21  ;;  %3259 = vmatpush3.msra.mxu0 %v2100_v52 }
 0x291   : > { %3303 = vmatpush3.msra.mxu1 %v2132_v22  ;;  %3260 = vmatprep.subr.mxu0 %v2115_v7 }
 0x292   : > { %3304 = vmatprep.subr.mxu1 %v2147_v24  ;;  %3261 = vmatpush3.msra.mxu0 %v2099_v55 }
 0x293   : > { %3305 = vmatpush3.msra.mxu1 %v2131_v31  ;;  %2738 = vmatmul.mubr.f32.vlgmr.msra.gmra.mxu0 %v3991_v1 }
 0x294   : > { %2823 = vmatmul.mubr.f32.vlgmr.msra.gmra.mxu1 %v4000_v2  ;;  %2742 = vmatprep.mubr.f32.mxu0 %v4020_v25 }
 0x295   : > { %2827 = vmatprep.mubr.f32.mxu1 %v4022_v30 }
 0x297   : > { %2743 = vmatmul.mubr.f32.gmra.mxu0 %v4037_v29 }
 0x298   : > { %2828 = vmatmul.mubr.f32.gmra.mxu1 %v4041_v5  ;;  %2747 = vmatprep.mubr.f32.mxu0 %v4044_v33 }
 0x299   : > { %2832 = vmatprep.mubr.f32.mxu1 %v4051_v15 }
 0x29b   : > { %2748 = vmatmul.mubr.f32.gmra.mxu0 %v4063_v27 }
 0x29c   : > { %2833 = vmatmul.mubr.f32.gmra.mxu1 %v4066_v39  ;;  %3039 = vmatprep.mubr.msk.f32.mxu0 %vm2082_vm4, %v4069_v34 }
 0x29d   : > { %3041 = vmatprep.mubr.msk.f32.mxu1 %vm2082_vm4, %v4073_v49 }
 0x29f   : > { %3040 = vmatmul.mubr.msk.f32.gmra.mxu0 %vm2082_vm4, %v4077_v4 }
 0x2a0   : > { %3042 = vmatmul.mubr.msk.f32.gmra.mxu1 %vm2082_vm4, %v4082_v40 }
 0x304   : > { %v4141_v1 = vpop.f32.mrf.mxu0  ;;  %v4143_v2 = vpop.f32.mrf.mxu1 }
 0x306   : > { %v4145_v25 = vpop.f32.mrf.mxu0  ;;  %v4147_v30 = vpop.f32.mrf.mxu1 }
 0x307   : > { %v3088_v22 = vadd.f32 %v4145_v25, %v4141_v1  ;;  %v3132_v7 = vadd.f32 %v4147_v30, %v4143_v2 }
 0x30a   : > { %v3089_v29 = vpop.f32.mrf.mxu0 }
 0x30b   : > { %v3133_v5 = vpop.f32.mrf.mxu1 }
 0x30c   : > { %v3090_v33 = vpop.f32.mrf.mxu0 }
 0x30d   : > { %v3134_v15 = vpop.f32.mrf.mxu1  ;;  %v3091_v21 = vadd.f32 %v3090_v33, %v3089_v29  ;;  %v2443_v29 = vadd.f32 %v3132_v7, %v3088_v22 }
 0x30e   : > { %v3135_v52 = vadd.f32 %v3134_v15, %v3133_v5 }
 0x310   : > { %v4149_v27 = vpop.f32.mrf.mxu0  ;;  %v2448_v55 = vadd.f32 %v3135_v52, %v3091_v21 }
 0x311   : > { %v4151_v39 = vpop.f32.mrf.mxu1 }
 0x312   : > { %v3093_v34 = vpop.f32.mrf.mxu0  ;;  %v2662_v25 = vrot.slane %v2448_v55, 2 }
 0x313   : > { %v3137_v49 = vpop.f32.mrf.mxu1  ;;  %v3094_v31 = vadd.f32 %v3093_v34, %v4149_v27 }
 0x316   : > { %v4153_v20 = vpop.f32.mrf.mxu0 }
 0x317   : > { %v4155_v4 = vpop.f32.mrf.mxu1 }
 0x318   : > { %v4157_v40 = vpop.f32.mrf.mxu0 }
 0x319   : > { %v4159_v32 = vpop.f32.mrf.mxu1  ;;  %v3097_v2 = vadd.f32 %v4157_v40, %v4153_v20 }
 0x31a   : > { %v3141_v30 = vadd.f32 %v4159_v32, %v4155_v4 }
 0x32b   : > { %v3174_v41 = vpop.f32.mrf.mxu0 }
 0x32c   : > { %v3218_v8 = vpop.f32.mrf.mxu1 }
 0x32d   : > { %v3175_v53 = vpop.f32.mrf.mxu0 }
 0x32e   : > { %v3176_v37 = vadd.f32 %v3175_v53, %v3174_v41  ;;  %v3219_v59 = vpop.f32.mrf.mxu1  ;;  %v3138_v41 = vadd.f32 %v3137_v49, %v4151_v39  ;;  %v2661_v39 = vrot.slane %v2443_v29, 2 }
 0x32f   : > { %v3220_v48 = vadd.f32 %v3219_v59, %v3218_v8 }
 0x330   : > { %v2530_v63 = vadd.f32 %v3176_v37, %v4161_v56  ;;  %v2453_v5 = vadd.f32 %v3138_v41, %v3094_v31 }
 0x331   : > { %v3177_v51 = vpop.f32.mrf.mxu0 }
 0x332   : > { %v2615_v28 = vadd.f32 %v3220_v48, %v2530_v63  ;;  %v3221_v50 = vpop.f32.mrf.mxu1  ;;  %v2664_v59 = vrot.slane %v2453_v5, 2  ;;  %v2458_v63 = vadd.f32 %v3141_v30, %v3097_v2  ;;  %v2663_v48 = vsel %vm1139_vm3, %v2661_v39, %v2662_v25 }
 0x333   : > { %v3178_v61 = vpop.f32.mrf.mxu0 }
 0x334   : > { %v3035_v0 = vmul.f32 -1.442695, %v2615_v28  ;;  %v3179_v57 = vadd.f32 %v3178_v61, %v3177_v51  ;;  %v3222_v42 = vpop.f32.mrf.mxu1 }
 0x335   : > { %v3223_v54 = vadd.f32 %v3222_v42, %v3221_v50  ;;  %v2665_v42 = vsel %vm1139_vm3, %v2662_v25, %v2664_v59 }
 0x336   : > { %3383 = vpow2.f32 %v3035_v0  ;;  %v2535_v9 = vadd.f32 %v3179_v57, %v4161_v56  ;;  %v2666_v57 = vrot.slane %v2458_v63, 2 }
 0x337   : > { %v3180_v36 = vpop.f32.mrf.mxu0 }
 0x338   : > { %v2620_v58 = vadd.f32 %v3223_v54, %v2535_v9  ;;  %v3224_v60 = vpop.f32.mrf.mxu1 }
 0x339   : > { %v3181_v44 = vpop.f32.mrf.mxu0 }
 0x33a   : > { %v3036_v43 = vmul.f32 -1.442695, %v2620_v58  ;;  %v3182_v16 = vadd.f32 %v3181_v44, %v3180_v36  ;;  %v3225_v17 = vpop.f32.mrf.mxu1 }
 0x33b   : > { %v3226_v18 = vadd.f32 %v3225_v17, %v3224_v60 }
 0x33c   : > { %3385 = vpow2.f32 %v3036_v43  ;;  %v2540_v6 = vadd.f32 %v3182_v16, %v4161_v56 }
 0x33d   : > { %v3183_v19 = vpop.f32.mrf.mxu0 }
 0x33e   : > { %v2625_v14 = vadd.f32 %v3226_v18, %v2540_v6  ;;  %v3227_v26 = vpop.f32.mrf.mxu1 }
 0x33f   : > { %v3184_v3 = vpop.f32.mrf.mxu0 }
 0x340   : > { %v3037_v46 = vmul.f32 -1.442695, %v2625_v14  ;;  %v3185_v12 = vadd.f32 %v3184_v3, %v3183_v19  ;;  %v3228_v47 = vpop.f32.mrf.mxu1  ;;  %v2667_v19 = vsel %vm1139_vm3, %v2664_v59, %v2666_v57 }
 0x341   : > { %v3229_v13 = vadd.f32 %v3228_v47, %v3227_v26 }
 0x342   : > { %3387 = vpow2.f32 %v3037_v46  ;;  %v2545_v45 = vadd.f32 %v3185_v12, %v4161_v56 }
 0x343   : > { %v3384_v23 = vpop.eup %3383 }
 0x344   : > { %v2645_v38 = vadd.f32 1.0, %v3384_v23  ;;  %v2630_v35 = vadd.f32 %v3229_v13, %v2545_v45 }
 0x346   : > { %3389 = vrcp.f32 %v2645_v38  ;;  %v3038_v62 = vmul.f32 -1.442695, %v2630_v35  ;;  %v2672_v35 = vsel %vm1139_vm3, %v2666_v57, 0.0 }
 0x348   : > { %3391 = vpow2.f32 %v3038_v62 }
 0x349   : > { %v3386_v11 = vpop.eup %3385 }
 0x34a   : > { %v2646_v10 = vadd.f32 1.0, %v3386_v11 }
 0x34c   : > { %3393 = vrcp.f32 %v2646_v10 }
 0x34f   : > { %v3388_v24 = vpop.eup %3387 }
 0x350   : > { %v2647_v8 = vadd.f32 1.0, %v3388_v24 }
 0x352   : > { %3395 = vrcp.f32 %v2647_v8 }
 0x353   : > { %v3390_v1 = vpop.eup %3389  ;;  %v3262_v33 = vpop.f32.mrf.mxu0 }
 0x354   : > { %2871 = vst [vmem:[%s4177_s23] sm:$0xff] %v3390_v1  ;;  %v3306_v15 = vpop.f32.mrf.mxu1 }
 0x355   : > { %v3392_v27 = vpop.eup %3391  ;;  %v3263_v34 = vpop.f32.mrf.mxu0 }
 0x356   : > { %v2648_v49 = vadd.f32 1.0, %v3392_v27  ;;  %v3264_v53 = vadd.f32 %v3263_v34, %v3262_v33  ;;  %v3307_v37 = vpop.f32.mrf.mxu1 }
 0x357   : > { %v3265_v51 = vpop.f32.mrf.mxu0  ;;  %v3308_v40 = vadd.f32 %v3307_v37, %v3306_v15 }
 0x358   : > { %3397 = vrcp.f32 %v2648_v49  ;;  %v2740_v20 = vadd.f32 %v3264_v53, %v2663_v48  ;;  %v3309_v28 = vpop.f32.mrf.mxu1 }
 0x359   : > { %v3394_v4 = vpop.eup %3393  ;;  %v3266_v32 = vpop.f32.mrf.mxu0 }
 0x35a   : > { %2872 = vst [vmem:[%s4177_s23 + $0x8] sm:$0xff] %v3394_v4  ;;  %v2825_v50 = vadd.f32 %v3308_v40, %v2740_v20  ;;  %v3267_v61 = vadd.f32 %v3266_v32, %v3265_v51  ;;  %v3310_v0 = vpop.f32.mrf.mxu1 }
 0x35b   : > { %v3268_v9 = vpop.f32.mrf.mxu0  ;;  %v3311_v58 = vadd.f32 %v3310_v0, %v3309_v28 }
 0x35c   : > { %v2843_v54 = vadd.f32 %v2825_v50, %v4161_v56  ;;  %v2745_v36 = vadd.f32 %v3267_v61, %v2665_v42  ;;  %v3312_v60 = vpop.f32.mrf.mxu1 }
 0x35d   : > { %v3269_v44 = vpop.f32.mrf.mxu0 }
 0x35e   : > { %v3043_v43 = vmul.f32 -1.442695, %v2843_v54  ;;  %v2830_v16 = vadd.f32 %v3311_v58, %v2745_v36  ;;  %v3270_v17 = vadd.f32 %v3269_v44, %v3268_v9  ;;  %v3313_v6 = vpop.f32.mrf.mxu1 }
 0x35f   : > { %v3396_v18 = vpop.eup %3395  ;;  %v3271_v14 = vpop.f32.mrf.mxu0  ;;  %v3314_v46 = vadd.f32 %v3313_v6, %v3312_v60 }
 0x360   : > { %2873 = vst [vmem:[%s4177_s23 + $0x10] sm:$0xff] %v3396_v18  ;;  %3399 = vpow2.f32 %v3043_v43  ;;  %v2844_v26 = vadd.f32 %v2830_v16, %v4161_v56  ;;  %v2750_v3 = vadd.f32 %v3270_v17, %v2667_v19  ;;  %v3315_v12 = vpop.f32.mrf.mxu1 }
 0x361   : > { %v3272_v47 = vpop.f32.mrf.mxu0 }
 0x362   : > { %v3044_v45 = vmul.f32 -1.442695, %v2844_v26  ;;  %v2835_v13 = vadd.f32 %v3314_v46, %v2750_v3  ;;  %v3273_v23 = vadd.f32 %v3272_v47, %v3271_v14  ;;  %v3316_v38 = vpop.f32.mrf.mxu1 }
 0x363   : > { %v3317_v10 = vadd.f32 %v3316_v38, %v3315_v12 }
 0x364   : > { %3401 = vpow2.f32 %v3044_v45  ;;  %v2845_v62 = vadd.f32 %v2835_v13, %v4161_v56  ;;  %v2755_v11 = vadd.f32 %v3273_v23, %v2672_v35 }
 0x365   : > { %v3398_v21 = vpop.eup %3397 }
 0x366   : > { %2874 = vst [vmem:[%s4177_s23 + $0x18] sm:$0xff] %v3398_v21  ;;  %v3045_v52 = vmul.f32 -1.442695, %v2845_v62  ;;  %v2840_v22 = vadd.f32 %v3317_v10, %v2755_v11 }
 0x368   : > { %3403 = vpow2.f32 %v3045_v52  ;;  %v2846_v7 = vadd.f32 %v2840_v22, %v4161_v56 }
 0x36a   : > { %v3046_v24 = vmul.f32 -1.442695, %v2846_v7 }
 0x36c   : > { %3405 = vpow2.f32 %v3046_v24 }
 0x36d   : > { %v3400_v55 = vpop.eup %3399 }
 0x36e   : > { %v2859_v31 = vadd.f32 1.0, %v3400_v55 }
 0x370   : > { %3407 = vrcp.f32 %v2859_v31 }
 0x371   : > { %v3402_v41 = vpop.eup %3401 }
 0x372   : > { %v2860_v8 = vadd.f32 1.0, %v3402_v41 }
 0x374   : > { %3409 = vrcp.f32 %v2860_v8 }
 0x375   : > { %v3404_v29 = vpop.eup %3403 }
 0x376   : > { %v2861_v1 = vadd.f32 1.0, %v3404_v29 }
 0x378   : > { %3411 = vrcp.f32 %v2861_v1 }
 0x379   : > { %v3406_v25 = vpop.eup %3405 }
 0x37a   : > { %v2862_v5 = vadd.f32 1.0, %v3406_v25 }
 0x37c   : > { %3413 = vrcp.f32 %v2862_v5 }
 0x37d   : > { %v3408_v2 = vpop.eup %3407 }
 0x37e   : > { %3047 = vst [vmem:[%s4177_s23 + $0x20] sm:$0xff] %v3408_v2 }
 0x381   : > { %v3410_v56 = vpop.eup %3409 }
 0x382   : > { %3048 = vst [vmem:[%s4177_s23 + $0x28] sm:$0xff] %v3410_v56 }
 0x385   : > { %v3412_v30 = vpop.eup %3411 }
 0x386   : > { %3049 = vst [vmem:[%s4177_s23 + $0x30] sm:$0xff] %v3412_v30 }
 0x389   : > { %v3414_v33 = vpop.eup %3413 }
 0x38a   : > { %3050 = vst [vmem:[%s4177_s23 + $0x38] sm:$0xff] %v3414_v33 }
 0x38b PF: > { %s21_s26 = sadd.s32 1, %s3563_s26  }
 0x38c   : > { %p18_p12 = scmp.ge.s32.totalorder %s21_s26, 4  }
 0x38e   :  { %20 = sbr.rel (!%p18_p12) target bundleno = 5 (0x5), region = 100 }
 0x393   :  { %2901 = vsyncpa [#allocation4], 1 }
 0x394   :  { %2903 = vsyncpa [#allocation4 + $0x1], 1 }
 0x395   :  { %2904 = vsyncpa [#allocation6], 1 }
 0x396   :  { %2905 = vsyncpa [#allocation9], 1 }

</bundles_post_ra>
